<compile_context>
chip_gen: v7x
topology: tpu7x:2x2x1
jax: 0.10.0
libtpu: 0.0.40
codegen_flags: <defaults>
</compile_context>

<pallas_src>
import jax
import jax.numpy as jnp
from jax.experimental import pallas as pl
from jax.experimental.pallas import tpu as pltpu

# --- module-consistent sizes (d_model from the PyTorch spec) -----------------
D_MODEL = 512            # d_model
D_HIDDEN = 4 * D_MODEL   # 4 * d_model
B = 2                    # small example batch
T = 8                    # small example sequence length


def _round_up(n, m):
    return (n + m - 1) // m * m


def ffn_kernel(x_ref, w1_ref, b1_ref, w2_ref, b2_ref, o_ref, acc_ref):
    """One (row-tile, hidden-chunk) step of y = ReLU(x@W1 + b1) @ W2 + b2."""
    k = pl.program_id(1)

    @pl.when(k == 0)
    def _():
        # Fold the output bias into the accumulator init (saves a full-tile
        # VPU add in the epilogue; the broadcast happens once per row tile,
        # not once per reduction step).
        acc_ref[...] = jnp.broadcast_to(b2_ref[...], acc_ref.shape)

    # First matmul: (TILE_M, C) bf16 @ (C, TILE_H) bf16 -> f32 on the MXU.
    h = jnp.dot(x_ref[...], w1_ref[...], preferred_element_type=jnp.float32)
    # Bias + ReLU in f32 (bf16 only at the MXU operands).
    h = jnp.maximum(h + b1_ref[...], 0.0)
    # Second matmul: accumulate this hidden chunk's contribution in f32 VMEM.
    acc_ref[...] += jnp.dot(h.astype(w2_ref.dtype), w2_ref[...],
                            preferred_element_type=jnp.float32)

    @pl.when(k == pl.num_programs(1) - 1)
    def _():
        # Dropout evaluated in inference mode (identity).
        o_ref[...] = acc_ref[...].astype(o_ref.dtype)


def feedforward(x, w1, b1, w2, b2, *, tile_m=256, tile_h=512):
    """x: (B, T, C) f32 -> (B, T, C) f32."""
    b_, t_, c_ = x.shape
    hd = w1.shape[1]
    bt = b_ * t_

    # Row tile: capped, kept a multiple of 8 sublanes; pad rows if needed.
    tile_m = min(tile_m, _round_up(bt, 8))
    bt_pad = _round_up(bt, tile_m)
    tile_h = min(tile_h, hd)
    assert hd % tile_h == 0 and c_ % 128 == 0 and tile_m % 8 == 0

    # bf16 streaming operands; f32 biases (tiny).
    x2 = x.reshape(bt, c_).astype(jnp.bfloat16)
    if bt_pad != bt:
        x2 = jnp.pad(x2, ((0, bt_pad - bt), (0, 0)))
    w1b = w1.astype(jnp.bfloat16)
    w2b = w2.astype(jnp.bfloat16)
    b1f = b1.reshape(1, hd).astype(jnp.float32)
    b2f = b2.reshape(1, c_).astype(jnp.float32)

    grid = (bt_pad // tile_m, hd // tile_h)

    out = pl.pallas_call(
        ffn_kernel,
        out_shape=jax.ShapeDtypeStruct((bt_pad, c_), jnp.float32),
        grid_spec=pltpu.PrefetchScalarGridSpec(
            num_scalar_prefetch=0,
            grid=grid,  # (row tiles, hidden chunks); reduction axis last
            in_specs=[
                # x tile: constant over k -> fetched once per row tile.
                pl.BlockSpec((tile_m, c_), lambda i, k: (i, 0)),
                # W1 hidden chunk: streamed / double-buffered along k.
                pl.BlockSpec((c_, tile_h), lambda i, k: (0, k)),
                # b1 hidden chunk.
                pl.BlockSpec((1, tile_h), lambda i, k: (0, k)),
                # W2 hidden chunk.
                pl.BlockSpec((tile_h, c_), lambda i, k: (k, 0)),
                # b2: constant block, stays resident.
                pl.BlockSpec((1, c_), lambda i, k: (0, 0)),
            ],
            out_specs=pl.BlockSpec((tile_m, c_), lambda i, k: (i, 0)),
            scratch_shapes=[pltpu.VMEM((tile_m, c_), jnp.float32)],
        ),
        compiler_params=pltpu.CompilerParams(
            # Row tiles shard across TensorCores on v7x; hidden axis is the
            # sequential reduction.
            dimension_semantics=("parallel", "arbitrary"),
            # ~4 MiB actually needed; cap well under v7x's 64 MiB physical.
            vmem_limit_bytes=48 * 1024 * 1024,
        ),
    )(x2, w1b, b1f, w2b, b2f)

    return out[:bt].reshape(b_, t_, c_).astype(x.dtype)


def reference_feedforward(x, w1, b1, w2, b2):
    """Pure-JAX reference with matched numerics (bf16 MXU operands, f32 acc)."""
    xb = x.astype(jnp.bfloat16)
    h = jnp.dot(xb, w1.astype(jnp.bfloat16),
                preferred_element_type=jnp.float32) + b1
    h = jnp.maximum(h, 0.0)
    y = jnp.dot(h.astype(jnp.bfloat16), w2.astype(jnp.bfloat16),
                preferred_element_type=jnp.float32) + b2
    return y


if __name__ == "__main__":
    key = jax.random.PRNGKey(0)
    k_w1, k_b1, k_w2, k_x = jax.random.split(key, 4)
    sc = 0.02

    # Linear weights stored already transposed so y = x @ W (+ b), matching
    # torch.nn.Linear(d_model, 4*d_model) / Linear(4*d_model, d_model).
    w1 = jax.random.normal(k_w1, (D_MODEL, D_HIDDEN), jnp.float32) * sc
    b1 = jax.random.normal(k_b1, (1, D_HIDDEN), jnp.float32) * sc
    w2 = jax.random.normal(k_w2, (D_HIDDEN, D_MODEL), jnp.float32) * sc
    b2 = jnp.zeros((1, D_MODEL), jnp.float32)

    x = jax.random.normal(k_x, (B, T, D_MODEL), jnp.float32)

    out = feedforward(x, w1, b1, w2, b2)
    out = jax.block_until_ready(out)

    ref = reference_feedforward(x, w1, b1, w2, b2)
    assert out.shape == (B, T, D_MODEL)
    assert jnp.allclose(out, ref, atol=2e-3, rtol=2e-3), "mismatch vs JAX reference"

    print("KERNEL_OK")
</pallas_src>

<mosaic_0001>
module attributes {stable_mosaic.version = 11 : i64} {
  func.func @ffn_kernel(%arg0: i32, %arg1: i32, %arg2: memref<16x512xbf16, #tpu.memory_space<vmem>>, %arg3: memref<512x512xbf16, #tpu.memory_space<vmem>>, %arg4: memref<1x512xf32, #tpu.memory_space<vmem>>, %arg5: memref<512x512xbf16, #tpu.memory_space<vmem>>, %arg6: memref<1x512xf32, #tpu.memory_space<vmem>>, %arg7: memref<16x512xf32, #tpu.memory_space<vmem>>, %arg8: memref<16x512xf32, #tpu.memory_space<vmem>>) attributes {dimension_semantics = [#tpu.dimension_semantics<parallel>, #tpu.dimension_semantics<arbitrary>], iteration_bounds = array<i64: 1, 4>, scalar_prefetch = 0 : i64, scratch_operands = 1 : i64, tpu.core_type = #tpu.core_type<tc>, window_params = [{transform_indices = @transform_0, window_bounds = array<i64: 16, 512>}, {transform_indices = @transform_1, window_bounds = array<i64: 512, 512>}, {transform_indices = @transform_2, window_bounds = array<i64: 1, 512>}, {transform_indices = @transform_3, window_bounds = array<i64: 512, 512>}, {pipeline_mode = #tpu.pipeline_mode<synchronous>, transform_indices = @transform_4, window_bounds = array<i64: 1, 512>}, {transform_indices = @transform_5, window_bounds = array<i64: 16, 512>}]} {
    %c0_i32 = arith.constant 0 : i32
    %0 = arith.cmpi eq, %arg1, %c0_i32 : i32
    %1 = arith.extui %0 : i1 to i32
    %c0_i32_0 = arith.constant 0 : i32
    %2 = arith.cmpi ne, %1, %c0_i32_0 : i32
    scf.if %2 {
      %c0_15 = arith.constant 0 : index
      %c0_16 = arith.constant 0 : index
      %20 = vector.load %arg6[%c0_15, %c0_16] : memref<1x512xf32, #tpu.memory_space<vmem>>, vector<1x512xf32>
      %21 = vector.shape_cast %20 : vector<1x512xf32> to vector<1x512xf32>
      %22 = vector.broadcast %21 : vector<1x512xf32> to vector<16x512xf32>
      %c0_17 = arith.constant 0 : index
      %c0_18 = arith.constant 0 : index
      %23 = vector.load %arg8[%c0_17, %c0_18] : memref<16x512xf32, #tpu.memory_space<vmem>>, vector<16x512xf32>
      tpu.vector_store %arg8[%c0_17, %c0_18], %22 {strides = array<i32>} : memref<16x512xf32, #tpu.memory_space<vmem>>, vector<16x512xf32>,
    } else {
    }
    %c0 = arith.constant 0 : index
    %c0_1 = arith.constant 0 : index
    %3 = vector.load %arg2[%c0, %c0_1] : memref<16x512xbf16, #tpu.memory_space<vmem>>, vector<16x512xbf16>
    %c0_2 = arith.constant 0 : index
    %c0_3 = arith.constant 0 : index
    %4 = vector.load %arg3[%c0_2, %c0_3] : memref<512x512xbf16, #tpu.memory_space<vmem>>, vector<512x512xbf16>
    %cst = arith.constant dense<0.000000e+00> : vector<16x512xf32>
    %5 = tpu.matmul %3, %4, %cst {dimension_numbers = #tpu.dot_dimension_numbers<[1], [0], [0], [1], [0, 0, 1, 1], [], []>} : vector<16x512xbf16>, vector<512x512xbf16>, vector<16x512xf32> -> vector<16x512xf32>
    %c0_4 = arith.constant 0 : index
    %c0_5 = arith.constant 0 : index
    %6 = vector.load %arg4[%c0_4, %c0_5] : memref<1x512xf32, #tpu.memory_space<vmem>>, vector<1x512xf32>
    %7 = vector.broadcast %6 : vector<1x512xf32> to vector<16x512xf32>
    %8 = arith.addf %5, %7 : vector<16x512xf32>
    %cst_6 = arith.constant 0.000000e+00 : f32
    %9 = vector.broadcast %cst_6 : f32 to vector<16x512xf32>
    %10 = arith.maximumf %8, %9 : vector<16x512xf32>
    %c0_7 = arith.constant 0 : index
    %c0_8 = arith.constant 0 : index
    %11 = vector.load %arg8[%c0_7, %c0_8] : memref<16x512xf32, #tpu.memory_space<vmem>>, vector<16x512xf32>
    %12 = arith.truncf %10 : vector<16x512xf32> to vector<16x512xbf16>
    %c0_9 = arith.constant 0 : index
    %c0_10 = arith.constant 0 : index
    %13 = vector.load %arg5[%c0_9, %c0_10] : memref<512x512xbf16, #tpu.memory_space<vmem>>, vector<512x512xbf16>
    %cst_11 = arith.constant dense<0.000000e+00> : vector<16x512xf32>
    %14 = tpu.matmul %12, %13, %cst_11 {dimension_numbers = #tpu.dot_dimension_numbers<[1], [0], [0], [1], [0, 0, 1, 1], [], []>} : vector<16x512xbf16>, vector<512x512xbf16>, vector<16x512xf32> -> vector<16x512xf32>
    %15 = arith.addf %11, %14 : vector<16x512xf32>
    %c0_12 = arith.constant 0 : index
    %c0_13 = arith.constant 0 : index
    %16 = vector.load %arg8[%c0_12, %c0_13] : memref<16x512xf32, #tpu.memory_space<vmem>>, vector<16x512xf32>
    tpu.vector_store %arg8[%c0_12, %c0_13], %15 {strides = array<i32>} : memref<16x512xf32, #tpu.memory_space<vmem>>, vector<16x512xf32>,
    %c3_i32 = arith.constant 3 : i32
    %17 = arith.cmpi eq, %arg1, %c3_i32 : i32
    %18 = arith.extui %17 : i1 to i32
    %c0_i32_14 = arith.constant 0 : i32
    %19 = arith.cmpi ne, %18, %c0_i32_14 : i32
    scf.if %19 {
      %c0_15 = arith.constant 0 : index
      %c0_16 = arith.constant 0 : index
      %20 = vector.load %arg8[%c0_15, %c0_16] : memref<16x512xf32, #tpu.memory_space<vmem>>, vector<16x512xf32>
      %c0_17 = arith.constant 0 : index
      %c0_18 = arith.constant 0 : index
      %21 = vector.load %arg7[%c0_17, %c0_18] : memref<16x512xf32, #tpu.memory_space<vmem>>, vector<16x512xf32>
      tpu.vector_store %arg7[%c0_17, %c0_18], %20 {strides = array<i32>} : memref<16x512xf32, #tpu.memory_space<vmem>>, vector<16x512xf32>,
    } else {
    }
    return
  }
  func.func @transform_0(%arg0: i32, %arg1: i32) -> (i32, i32) {
    %c0_i32 = arith.constant 0 : i32
    %c0_i32_0 = arith.constant 0 : i32
    return %arg0, %c0_i32 : i32, i32
  }
  func.func @transform_1(%arg0: i32, %arg1: i32) -> (i32, i32) {
    %c0_i32 = arith.constant 0 : i32
    %c0_i32_0 = arith.constant 0 : i32
    return %c0_i32, %arg1 : i32, i32
  }
  func.func @transform_2(%arg0: i32, %arg1: i32) -> (i32, i32) {
    %c0_i32 = arith.constant 0 : i32
    %c0_i32_0 = arith.constant 0 : i32
    return %c0_i32, %arg1 : i32, i32
  }
  func.func @transform_3(%arg0: i32, %arg1: i32) -> (i32, i32) {
    %c0_i32 = arith.constant 0 : i32
    %c0_i32_0 = arith.constant 0 : i32
    return %arg1, %c0_i32 : i32, i32
  }
  func.func @transform_4(%arg0: i32, %arg1: i32) -> (i32, i32) {
    %c0_i32 = arith.constant 0 : i32
    %c0_i32_0 = arith.constant 0 : i32
    %c0_i32_1 = arith.constant 0 : i32
    return %c0_i32, %c0_i32_0 : i32, i32
  }
  func.func @transform_5(%arg0: i32, %arg1: i32) -> (i32, i32) {
    %c0_i32 = arith.constant 0 : i32
    %c0_i32_0 = arith.constant 0 : i32
    return %arg0, %c0_i32 : i32, i32
  }
}

</mosaic_0001>

<bundles_post_ra>
// kernel: tpu_custom_call.1
= control target key start
LH: loop header
LB: loop body
LE: loop exit
PB: predicated region body
PF: predicated region fallthrough
CT: control target
= control target key end

     0   :  { %s4167_s0 = inlined_call_operand.hbm [shape: bf16[16,512], index: 0, kind: input, shape index: {}]   ;;  %s4168_s1 = inlined_call_operand.hbm [shape: bf16[512,2048], index: 1, kind: input, shape index: {}]   ;;  %s4169_s2 = inlined_call_operand.hbm [shape: f32[1,2048], index: 2, kind: input, shape index: {}]   ;;  %s4170_s3 = inlined_call_operand.hbm [shape: bf16[2048,512], index: 3, kind: input, shape index: {}]   ;;  %s4171_s4 = inlined_call_operand.hbm [shape: f32[1,512], index: 4, kind: input, shape index: {}]   ;;  %s4172_s5 = inlined_call_operand.hbm [shape: f32[16,512], index: 5, kind: output, shape index: {}]  }
   0x1   :  { %4187 = sst [smem:[#allocation21_spill]] %s4168_s1 }
   0x2   :  { %4188 = sst [smem:[#allocation22_spill]] %s4171_s4 }
   0x3   :  { %4189 = sst [smem:[#allocation23_spill]] %s4172_s5 }
   0x4   :  { %10 = vsyncpa [#allocation4], 0 }
   0x5   :  { %11 = vsyncpa [#allocation7], 0 }
   0x6   :  { %13 = vsyncpa [#allocation7 + $0x1], 0 }
   0x7   :  { %14 = vsyncpa [#allocation10], 0 }
   0x8   :  { %16 = vsyncpa [#allocation10 + $0x1], 0 }
   0x9   :  { %17 = vsyncpa [#allocation5], 0  ;;  %s3605_s18 = smov 0   ;;  %s3607_s19 = smov 0  }
   0xa   :  { %s3609_s20 = smov 0   ;;  %s3611_s21 = smov 0  }
   0xb   :  { %s3613_s22 = smov 0   ;;  %s3615_s23 = smov 0  }
   0xc LB: > { %4190 = sst [smem:[#allocation18_spill]] %s3554_s21  ;;  %s3634_s24 = sadd.s32 4294967295, %s3562_s23   ;;  %s3562_s23 = sphi %s3615_s23, %s23_s23   ;;  %s3558_s22 = sphi %s3613_s22, %s4223_s22   ;;  %s3554_s21 = sphi %s3611_s21, %s4222_s21   ;;  %s3550_s20 = sphi %s3609_s20, %s4221_s20   ;;  %s3546_s19 = sphi %s3607_s19, %s4220_s19   ;;  %s3542_s18 = sphi %s3605_s18, %s4219_s18  }
   0xd   : > { %s68_s25 = sadd.s32 1, %s3550_s20  ;;  %p75_p0 = scmp.ne.s32.totalorder %s3550_s20, %s3546_s19 }
   0xe   : > { %p76_p1 = scmp.eq.s32.totalorder %s3562_s23, 0  ;;  %p81_p2 = scmp.ne.s32.totalorder %s3546_s19, %s3542_s18 }
   0xf   : > { %p4173_p3 = scmp.eq.s32.totalorder %s3634_s24, 0  ;;  %p2522_p5 = scmp.ge.s32.totalorder %s3562_s23, 1 }
  0x10   : > { %p77_p4 = por %p76_p1, %p75_p0  ;;  %p191_p7 = scmp.lt.s32.totalorder %s3562_s23, 5 }
  0x11   : > { %p3645_p6 = por %p4173_p3, %p81_p2  ;;  %s3564_s28 = smov [#allocation11]  }
  0x12   : > { %p3650_p8 = pnand %p2522_p5, %p191_p7  ;;  %s221_s29 = sshll.u32 %s3564_s28, 4  ;;  %s222_s29 = int_to_ptr.vmem [resolvable:$true] %s221_s29 }
  0x13   : > { %s4191_s26 = scalar_select %p3645_p6, 1, 0 }
  0x14   : > { %s4192_s27 = scalar_select %p3650_p8, 1, 0 }
  0x15   : > { %p2854_p9 = pneg %p3650_p8  ;;  %p2873_p10 = scmp.lt.s32.totalorder %s3562_s23, 4 }
  0x16   : > { %s4195_s4 = sld [smem:[#allocation22_spill]] }
  0x17   : > { %p3659_p11 = pnand %p2854_p9, %p4173_p3  ;;  %p3663_p12 = pnand %p2873_p10, %p77_p4 }
  0x19   : > { %s4193_s30 = scalar_select %p3659_p11, 1, 0 }
  0x1a   : > { %s4194_s6 = scalar_select %p3663_p12, 1, 0 }
  0x1b   : > { %p4178_p0 = pneg %p3659_p11 }
  0x1c   : > { %s3324_s9 = scalar_lea.hbm %s4195_s4, 64 }
  0x1d   : > { %p3325_p13 = scmp.ne.s32.totalorder %s4195_s4, %s3324_s9  ;;  %p3331_p4 = scmp.lt.u32.totalorder %s3324_s9, %s4195_s4 }
  0x1f   : > { %p3327_p1 = pnand %p4178_p0, %p3325_p13 }
  0x21   : > { %p3328_p2 = pneg %p3327_p1 }
  0x23   : > { %p3333_p5 = pnand %p3331_p4, %p3328_p2 }
  0x25   : > { %3336 = shalt.err (!%p3333_p5)
}
  0x26   : > { %s3337_s14 = scalar_lea.vmem %s222_s29, 64  ;;  %p3345_p3 = scmp.lt.s32.totalorder %s222_s29, %s222_s29 }
  0x27   : > { %p3338_p7 = scmp.ne.s32.totalorder %s222_s29, %s3337_s14  ;;  %p3346_p6 = scmp.lt.s32.totalorder %s3337_s14, %s3337_s14 }
  0x29   : > { %p3340_p9 = pnand %p3338_p7, %p4178_p0  ;;  %p3347_p8 = por %p3346_p6, %p3345_p3 }
  0x2b   : > { %p3341_p10 = pneg %p3340_p9 }
  0x2d   : > { %p3348_p12 = pnand %p3347_p8, %p3341_p10 }
  0x2f   : > { %3351 = shalt.err (!%p3348_p12)
}
  0x30   : > { %2860 = dma.hbm_to_vmem [thread:$0]  (!%p3659_p11), %s4195_s4, 64, %s222_s29, [#allocation10]  }
  0x31   : > { %s32_s17 = sadd.s32 1, %s3558_s22  ;;  %s4177_s18 = sand.u32 1, %s3562_s23  }
  0x32   : > { %p33_p3 = scmp.ge.s32.totalorder %s32_s17, 4  ;;  %s4181_s28 = sand.u32 1, %s3550_s20  }
  0x33   : > { %s2808_s7 = sshll.u32 %s3558_s22, 8  ;;  %s3697_s8 = sshll.u32 %s4181_s28, 10 }
  0x34   : > { %s4225_s17 = smov (%p33_p3, %s32_s17), 0  ;;  %s4197_s1 = sld [smem:[#allocation21_spill]] }
  0x35   : > { %4196 = sst [smem:[#allocation19_spill]] %s4225_s17  ;;  %s65_s29 = ssub.s32 %s3558_s22, %s4225_s17 }
  0x36   : > { %p66_p6 = scmp.eq.s32.totalorder %s65_s29, 0  ;;  %s236_s12 = scalar_lea.vmem [#allocation6], %s3697_s8 }
  0x37   : > { %s243_s13 = sshll.u32 %s236_s12, 4  ;;  %s3716_s15 = scalar_lea.sflag [#allocation7], %s4177_s18  ;;  %s3707_s13 = int_to_ptr.vmem [resolvable:$true] %s243_s13 }
  0x38   : > { %s3712_s14 = scalar_select %p66_p6, %s3550_s20, %s68_s25  }
  0x39   : > { %p4199_p12 = scmp.ne.s32.totalorder %s4194_s6, 0 }
  0x3a   : > { %s3702_s11 = scalar_lea.hbm %s4197_s1, %s2808_s7  ;;  %4198 = sst [smem:[#allocation20_spill]] %s3712_s14 }
  0x3b   : > { %s3352_s16 = scalar_lea.hbm %s3702_s11, 16384  ;;  %p3722_p13 = pneg %p4199_p12 }
  0x3c   : > { %p3353_p8 = scmp.ne.s32.totalorder %s3702_s11, %s3352_s16  ;;  %s3357_s29 = scalar_lea.hbm %s4197_s1, 65536 }
  0x3d   : > { %s4200_s7 = scalar_select %p3722_p13, 1, 0 }
  0x3e   : > { %p3355_p1 = pnand %p3722_p13, %p3353_p8  ;;  %p3358_p4 = scmp.lt.u32.totalorder %s3702_s11, %s4197_s1 }
  0x3f   : > { %p3359_p5 = scmp.lt.u32.totalorder %s3357_s29, %s3352_s16  ;;  %p3361_p9 = scmp.lt.u32.totalorder %s3352_s16, %s3702_s11 }
  0x40   : > { %p3356_p2 = pneg %p3355_p1 }
  0x41   : > { %p3360_p7 = por %p3359_p5, %p3358_p4 }
  0x43   : > { %p3362_p10 = por %p3361_p9, %p3360_p7 }
  0x45   : > { %p3363_p3 = pnand %p3362_p10, %p3356_p2 }
  0x47   : > { %3366 = shalt.err (!%p3363_p3)
}
  0x48   : > { %s3367_s18 = scalar_lea.vmem %s3707_s13, 16384  ;;  %s3565_s9 = smov [#allocation6]  }
  0x49   : > { %p3368_p6 = scmp.ne.s32.totalorder %s3707_s13, %s3367_s18  ;;  %s3372_s10 = sshll.u32 %s3565_s9, 4  ;;  %s3373_s10 = int_to_ptr.vmem [resolvable:$false] %s3372_s10 }
  0x4a   : > { %s3374_s25 = scalar_lea.vmem %s3373_s10, 32768  ;;  %p3375_p0 = scmp.lt.s32.totalorder %s3707_s13, %s3373_s10 }
  0x4b   : > { %p3370_p8 = pnand %p3368_p6, %p3722_p13  ;;  %p3376_p11 = scmp.lt.s32.totalorder %s3374_s25, %s3367_s18 }
  0x4d   : > { %p3371_p1 = pneg %p3370_p8  ;;  %p3377_p4 = por %p3376_p11, %p3375_p0 }
  0x4f   : > { %p3378_p5 = pnand %p3377_p4, %p3371_p1 }
  0x51   : > { %3381 = shalt.err (!%p3378_p5)
}
  0x52   : > { %s3566_s16 = smov 1024   ;;  %s3567_s29 = smov 256  }
  0x53   : > { %s3568_s12 = smov 16   ;;  %s3569_s9 = smov [#allocation3]  }
  0x54   : > { %2864 = dma.hbm_to_vmem [thread:$0]  (!%p4199_p12), %s3702_s11, 16384, %s3707_s13, %s3716_s15, %s3566_s16, %s3567_s29, %s3568_s12  }
  0x55   : > { %s207_s28 = sshll.u32 %s3569_s9, 4  ;;  %s4201_s18 = sand.u32 1, %s3550_s20   ;;  %s208_s28 = int_to_ptr.vmem [resolvable:$true] %s207_s28 }
  0x56   : > { %s2529_s10 = sshll.u32 %s4201_s18, 2  ;;  %s3382_s4 = scalar_lea.hbm %s4167_s0, 512 }
  0x57   : > { %p3383_p11 = scmp.ne.s32.totalorder %s4167_s0, %s3382_s4  ;;  %p4202_p0 = scmp.ne.s32.totalorder %s4193_s30, 0 }
  0x58   : > { %p3389_p10 = scmp.lt.u32.totalorder %s3382_s4, %s4167_s0 }
  0x59   : > { %p4203_p2 = pneg %p4202_p0 }
  0x5b   : > { %p3385_p7 = pnand %p3383_p11, %p4203_p2 }
  0x5d   : > { %p3386_p9 = pneg %p3385_p7 }
  0x5f   : > { %p3391_p3 = pnand %p3389_p10, %p3386_p9 }
  0x61   : > { %3394 = shalt.err (!%p3391_p3)
}
  0x62   : > { %s3395_s11 = scalar_lea.vmem %s208_s28, 512  ;;  %p4204_p8 = pmov %p4203_p2 }
  0x63   : > { %p3396_p6 = scmp.ne.s32.totalorder %s208_s28, %s3395_s11  ;;  %p3403_p5 = scmp.lt.s32.totalorder %s208_s28, %s208_s28 }
  0x64   : > { %p3404_p12 = scmp.lt.s32.totalorder %s3395_s11, %s3395_s11 }
  0x65   : > { %p3398_p1 = pnand %p3396_p6, %p4204_p8 }
  0x66   : > { %p3405_p13 = por %p3404_p12, %p3403_p5 }
  0x67   : > { %p3399_p4 = pneg %p3398_p1 }
  0x69   : > { %p3406_p2 = pnand %p3405_p13, %p3399_p4 }
  0x6b   : > { %3409 = shalt.err (!%p3406_p2)
}
  0x6c   : > { %2857 = dma.hbm_to_vmem [thread:$0]  (!%p4202_p0), %s4167_s0, 512, %s208_s28, [#allocation4], %s3567_s29, %s3567_s29, %s3568_s12  }
  0x6d   : > { %s2809_s5 = sshll.u32 %s3558_s22, 6  ;;  %s257_s30 = scalar_lea.vmem [#allocation8], %s2529_s10 }
  0x6e   : > { %s3777_s13 = scalar_lea.hbm %s4169_s2, %s2809_s5  ;;  %s265_s14 = sshll.u32 %s257_s30, 4  ;;  %s266_s14 = int_to_ptr.vmem [resolvable:$true] %s265_s14 }
  0x6f   : > { %s3410_s16 = scalar_lea.hbm %s3777_s13, 64  ;;  %p4205_p13 = scmp.ne.s32.totalorder %s4200_s7, 0 }
  0x70   : > { %p3411_p12 = scmp.ne.s32.totalorder %s3777_s13, %s3410_s16  ;;  %s3415_s18 = scalar_lea.hbm %s4169_s2, 256 }
  0x71   : > { %p3416_p0 = scmp.lt.u32.totalorder %s3777_s13, %s4169_s2  ;;  %p3417_p9 = scmp.lt.u32.totalorder %s3415_s18, %s3410_s16 }
  0x72   : > { %p3413_p11 = pnand %p3411_p12, %p4205_p13  ;;  %p3419_p3 = scmp.lt.u32.totalorder %s3410_s16, %s3777_s13 }
  0x73   : > { %p3418_p10 = por %p3417_p9, %p3416_p0 }
  0x74   : > { %p3414_p7 = pneg %p3413_p11 }
  0x75   : > { %p3420_p6 = por %p3419_p3, %p3418_p10 }
  0x77   : > { %p3421_p8 = pnand %p3420_p6, %p3414_p7 }
  0x79   : > { %3424 = shalt.err (!%p3421_p8)
}
  0x7a   : > { %s3425_s10 = scalar_lea.vmem %s266_s14, 64  ;;  %s3570_s1 = smov [#allocation8]  }
  0x7b   : > { %p3426_p1 = scmp.ne.s32.totalorder %s266_s14, %s3425_s10  ;;  %s3430_s4 = sshll.u32 %s3570_s1, 4  ;;  %s3431_s4 = int_to_ptr.vmem [resolvable:$false] %s3430_s4 }
  0x7c   : > { %s3432_s5 = scalar_lea.vmem %s3431_s4, 128  ;;  %p3433_p2 = scmp.lt.s32.totalorder %s266_s14, %s3431_s4 }
  0x7d   : > { %p3428_p4 = pnand %p3426_p1, %p4205_p13  ;;  %p3434_p12 = scmp.lt.s32.totalorder %s3432_s5, %s3425_s10 }
  0x7f   : > { %p3429_p5 = pneg %p3428_p4  ;;  %p3435_p11 = por %p3434_p12, %p3433_p2 }
  0x81   : > { %p3436_p0 = pnand %p3435_p11, %p3429_p5 }
  0x83   : > { %3439 = shalt.err (!%p3436_p0)
}
  0x84   : > { %p4206_p9 = scmp.ne.s32.totalorder %s4194_s6, 0  ;;  %s2811_s21 = sshll.u32 %s3558_s22, 14 }
  0x85   : > { %s3801_s16 = scalar_lea.hbm %s4170_s3, %s2811_s21  ;;  %s276_s9 = scalar_lea.vmem [#allocation9], %s3697_s8 }
  0x86   : > { %2867 = dma.hbm_to_vmem [thread:$0]  (!%p4206_p9), %s3777_s13, 64, %s266_s14, %s3716_s15  }
  0x87   : > { %s284_s28 = sshll.u32 %s276_s9, 4  ;;  %s4207_s18 = sand.u32 1, %s3562_s23   ;;  %s3804_s28 = int_to_ptr.vmem [resolvable:$true] %s284_s28 }
  0x88   : > { %s3808_s25 = scalar_lea.sflag [#allocation10], %s4207_s18  ;;  %s3440_s11 = scalar_lea.hbm %s3801_s16, 16384 }
  0x89   : > { %p3441_p7 = scmp.ne.s32.totalorder %s3801_s16, %s3440_s11  ;;  %s3445_s14 = scalar_lea.hbm %s4170_s3, 65536 }
  0x8a   : > { %p3446_p6 = scmp.lt.u32.totalorder %s3801_s16, %s4170_s3  ;;  %p3447_p8 = scmp.lt.u32.totalorder %s3445_s14, %s3440_s11 }
  0x8b   : > { %p3443_p10 = pnand %p3441_p7, %p4205_p13  ;;  %p3449_p4 = scmp.lt.u32.totalorder %s3440_s11, %s3801_s16 }
  0x8c   : > { %p3448_p1 = por %p3447_p8, %p3446_p6 }
  0x8d   : > { %p3444_p3 = pneg %p3443_p10 }
  0x8e   : > { %p3450_p5 = por %p3449_p4, %p3448_p1 }
  0x90   : > { %p3451_p2 = pnand %p3450_p5, %p3444_p3 }
  0x92   : > { %3454 = shalt.err (!%p3451_p2)
}
  0x93   : > { %s3455_s8 = scalar_lea.vmem %s3804_s28, 16384  ;;  %s3571_s4 = smov [#allocation9]  }
  0x94   : > { %p3456_p12 = scmp.ne.s32.totalorder %s3804_s28, %s3455_s8  ;;  %s3460_s5 = sshll.u32 %s3571_s4, 4  ;;  %s3461_s5 = int_to_ptr.vmem [resolvable:$false] %s3460_s5 }
  0x95   : > { %s3462_s21 = scalar_lea.vmem %s3461_s5, 32768  ;;  %p3463_p7 = scmp.lt.s32.totalorder %s3804_s28, %s3461_s5 }
  0x96   : > { %p3458_p11 = pnand %p3456_p12, %p4205_p13  ;;  %p3464_p10 = scmp.lt.s32.totalorder %s3462_s21, %s3455_s8 }
  0x98   : > { %p3459_p0 = pneg %p3458_p11  ;;  %p3465_p6 = por %p3464_p10, %p3463_p7 }
  0x9a   : > { %p3466_p8 = pnand %p3465_p6, %p3459_p0 }
  0x9c   : > { %3469 = shalt.err (!%p3466_p8)
}
  0x9d   : > { %2870 = dma.hbm_to_vmem [thread:$0]  (!%p4206_p9), %s3801_s16, 16384, %s3804_s28, %s3808_s25, %s3567_s29, %s3567_s29, %s3568_s12  }
  0x9e   : > { %p4208_p13 = scmp.ne.s32.totalorder %s4192_s27, 0 }
  0x9f   : > { %p4209_p3 = scmp.eq.s32.totalorder (!%p4208_p13), %s3634_s24, 0 }
  0xa0   : > { %296 = sbr.rel (%p4208_p13) target bundleno = 871 (0x367), region = 40 }
  0xa7   : > { %3521 = dma.done.wait (%p4209_p3), [#allocation4], 512   ;;  %p4210_p1 = pmov %p4209_p3 }
  0xa8   : > { %s302_s6 = sand.u32 1, %s3634_s24   ;;  %s304_s7 = sand.u32 1, %s3546_s19  }
  0xa9   : > { %3523 = vsyncadd (%p4210_p1), [#allocation4], 4294966784  ;;  %s2538_s17 = sshll.u32 %s304_s7, 10  ;;  %s303_s30 = scalar_lea.sflag [#allocation7], %s302_s6 }
  0xaa   : > { %s3843_s9 = scalar_lea.vmem [#allocation6], %s2538_s17  ;;  %p4211_p4 = scmp.ne.s32.totalorder %s4191_s26, 0 }
  0xac   : > { %3525 = dma.done.wait (%p4211_p4), %s303_s30, 16448  }
  0xad   : > { %3527 = vsyncadd (%p4211_p4), %s303_s30, 4294950848  ;;  %s3849_s27 = sshll.u32 %s304_s7, 2  ;;  %s321_s12 = scalar_lea.sflag [#allocation10], %s302_s6 }
  0xae   : > { %s315_s29 = scalar_lea.vmem [#allocation8], %s3849_s27  ;;  %s3852_s16 = scalar_lea.vmem [#allocation9], %s2538_s17 }
  0xaf   : > { %3529 = dma.done.wait (%p4211_p4), %s321_s12, 16384  }
  0xb0   : > { %3531 = vsyncadd (%p4211_p4), %s321_s12, 4294950912  ;;  %p4212_p9 = pmov %p4210_p1 }
  0xb1   : > { %p4213_p5 = pmov %p4210_p1 }
  0xb2   : > { %3533 = dma.done.wait (%p4212_p9), [#allocation10], 64  }
  0xb3   : > { %3535 = vsyncadd (%p4213_p5), [#allocation10], 4294967232  ;;  %s4214_s28 = sld [smem:[#allocation18_spill]] }
  0xb9   : > { %p2542_p2 = scmp.ne.s32.totalorder %s4214_s28, 0 }
  0xba   : > { %v371_v0 = vlaneseq (!%p2542_p2)  ;;  %v369_v2 = vld [vmem:[#allocation11] sm:$0xf] (!%p2542_p2) }
  0xbb   : > { %368 = sbr.rel (%p2542_p2) target bundleno = 198 (0xc6), region = 64 }
  0xbc   : > { %v372_v1 = vshrl.u32 (!%p2542_p2), %v371_v0, 7 }
  0xbe   : > { %v373_v3 = vsub.s32 (!%p2542_p2), 0, %v372_v1  ;;  %v377_v4 = vsub.s32 (!%p2542_p2), 1, %v372_v1  ;;  %v381_v5 = vsub.s32 (!%p2542_p2), 2, %v372_v1  ;;  %v385_v6 = vsub.s32 (!%p2542_p2), 3, %v372_v1 }
  0xc0   : > { %v374_v7 = vrot.slane (!%p2542_p2), %v369_v2, %v373_v3  ;;  %v378_v8 = vrot.slane (!%p2542_p2), %v369_v2, %v377_v4  ;;  %v382_v9 = vrot.slane (!%p2542_p2), %v369_v2, %v381_v5  ;;  %v386_v10 = vrot.slane (!%p2542_p2), %v369_v2, %v385_v6 }
  0xc2   : > { %391 = vst [vmem:[#allocation2] sm:$0xff] %v374_v7  ;;  %395 = vst [vmem:[#allocation2 + $0x20] sm:$0xff] %v374_v7 }
  0xc3   : > { %392 = vst [vmem:[#allocation2 + $0x8] sm:$0xff] %v378_v8  ;;  %396 = vst [vmem:[#allocation2 + $0x28] sm:$0xff] %v378_v8 }
  0xc4   : > { %393 = vst [vmem:[#allocation2 + $0x10] sm:$0xff] %v382_v9  ;;  %397 = vst [vmem:[#allocation2 + $0x30] sm:$0xff] %v382_v9 }
  0xc5   : > { %394 = vst [vmem:[#allocation2 + $0x18] sm:$0xff] %v386_v10  ;;  %398 = vst [vmem:[#allocation2 + $0x38] sm:$0xff] %v386_v10 }
  0xc6 PF: > { %v2934_v11 = vld [vmem:[%s3843_s9 + $0x4] ss:$16 sps:$4 sm:$0xff]   ;;  %v2936_v12 = vld [vmem:[%s3843_s9 + $0xc] ss:$16 sps:$4 sm:$0xff]   ;;  %v2938_v13 = vld [vmem:[%s3843_s9] ss:$16 sps:$4 sm:$0xff]  }
  0xc7   : > { %1213 = vmatprep.subr.bf16.mxu0 %v2934_v11  ;;  %v2939_v14 = vld [vmem:[%s3843_s9 + $0x8] ss:$16 sps:$4 sm:$0xff]   ;;  %1299 = vmatprep.subr.bf16.mxu1 %v2936_v12  ;;  %v2940_v15 = vld [vmem:[%s3843_s9 + $0x24] ss:$16 sps:$4 sm:$0xff]   ;;  %v2942_v16 = vld [vmem:[%s3843_s9 + $0x2c] ss:$16 sps:$4 sm:$0xff]  }
  0xc8   : > { %1214 = vmatpush1.bf16.msra.mxu0 %v2938_v13  ;;  %1300 = vmatpush1.bf16.msra.mxu1 %v2939_v14  ;;  %v2944_v17 = vld [vmem:[%s3843_s9 + $0x20] ss:$16 sps:$4 sm:$0xff]   ;;  %v2945_v18 = vld [vmem:[%s3843_s9 + $0x28] ss:$16 sps:$4 sm:$0xff]   ;;  %v2946_v19 = vld [vmem:[%s3843_s9 + $0x44] ss:$16 sps:$4 sm:$0xff]  }
  0xc9   : > { %1215 = vmatprep.subr.bf16.mxu0 %v2940_v15  ;;  %1301 = vmatprep.subr.bf16.mxu1 %v2942_v16  ;;  %v2948_v20 = vld [vmem:[%s3843_s9 + $0x4c] ss:$16 sps:$4 sm:$0xff]   ;;  %v2950_v21 = vld [vmem:[%s3843_s9 + $0x40] ss:$16 sps:$4 sm:$0xff]   ;;  %v2951_v22 = vld [vmem:[%s3843_s9 + $0x48] ss:$16 sps:$4 sm:$0xff]  }
  0xca   : > { %v2952_v23 = vld [vmem:[%s3843_s9 + $0x64] ss:$16 sps:$4 sm:$0xff]   ;;  %v2954_v24 = vld [vmem:[%s3843_s9 + $0x6c] ss:$16 sps:$4 sm:$0xff]   ;;  %v2956_v25 = vld [vmem:[%s3843_s9 + $0x60] ss:$16 sps:$4 sm:$0xff]  }
  0xcb   : > { %v2957_v26 = vld [vmem:[%s3843_s9 + $0x68] ss:$16 sps:$4 sm:$0xff]   ;;  %v2958_v27 = vld [vmem:[%s3843_s9 + $0x84] ss:$16 sps:$4 sm:$0xff]   ;;  %v2960_v28 = vld [vmem:[%s3843_s9 + $0x8c] ss:$16 sps:$4 sm:$0xff]  }
  0xcc   : > { %1216 = vmatpush1.bf16.msra.mxu0 %v2944_v17  ;;  %1302 = vmatpush1.bf16.msra.mxu1 %v2945_v18  ;;  %v2962_v29 = vld [vmem:[%s3843_s9 + $0x80] ss:$16 sps:$4 sm:$0xff]   ;;  %v2963_v30 = vld [vmem:[%s3843_s9 + $0x88] ss:$16 sps:$4 sm:$0xff]   ;;  %v2964_v31 = vld [vmem:[%s3843_s9 + $0xa4] ss:$16 sps:$4 sm:$0xff]  }
  0xcd   : > { %1217 = vmatprep.subr.bf16.mxu0 %v2946_v19  ;;  %1303 = vmatprep.subr.bf16.mxu1 %v2948_v20  ;;  %v2966_v32 = vld [vmem:[%s3843_s9 + $0xac] ss:$16 sps:$4 sm:$0xff]   ;;  %v2968_v33 = vld [vmem:[%s3843_s9 + $0xa0] ss:$16 sps:$4 sm:$0xff]   ;;  %v2969_v34 = vld [vmem:[%s3843_s9 + $0xa8] ss:$16 sps:$4 sm:$0xff]  }
  0xce   : > { %v2970_v35 = vld [vmem:[%s3843_s9 + $0xc4] ss:$16 sps:$4 sm:$0xff]   ;;  %v2972_v36 = vld [vmem:[%s3843_s9 + $0xcc] ss:$16 sps:$4 sm:$0xff]   ;;  %v2974_v37 = vld [vmem:[%s3843_s9 + $0xc0] ss:$16 sps:$4 sm:$0xff]  }
  0xcf   : > { %v2975_v38 = vld [vmem:[%s3843_s9 + $0xc8] ss:$16 sps:$4 sm:$0xff]   ;;  %v2976_v39 = vld [vmem:[%s3843_s9 + $0xe4] ss:$16 sps:$4 sm:$0xff]   ;;  %v2978_v40 = vld [vmem:[%s3843_s9 + $0xec] ss:$16 sps:$4 sm:$0xff]  }
  0xd0   : > { %1218 = vmatpush1.bf16.msra.mxu0 %v2950_v21  ;;  %1304 = vmatpush1.bf16.msra.mxu1 %v2951_v22  ;;  %v2980_v41 = vld [vmem:[%s3843_s9 + $0xe0] ss:$16 sps:$4 sm:$0xff]   ;;  %v2981_v42 = vld [vmem:[%s3843_s9 + $0xe8] ss:$16 sps:$4 sm:$0xff]   ;;  %v2982_v43 = vld [vmem:[%s3843_s9 + $0x104] ss:$16 sps:$4 sm:$0xff]  }
  0xd1   : > { %1219 = vmatprep.subr.bf16.mxu0 %v2952_v23  ;;  %1305 = vmatprep.subr.bf16.mxu1 %v2954_v24  ;;  %v2984_v44 = vld [vmem:[%s3843_s9 + $0x10c] ss:$16 sps:$4 sm:$0xff]   ;;  %v2986_v45 = vld [vmem:[%s3843_s9 + $0x100] ss:$16 sps:$4 sm:$0xff]   ;;  %v2987_v46 = vld [vmem:[%s3843_s9 + $0x108] ss:$16 sps:$4 sm:$0xff]  }
  0xd2   : > { %v2988_v47 = vld [vmem:[%s3843_s9 + $0x124] ss:$16 sps:$4 sm:$0xff]   ;;  %v2990_v48 = vld [vmem:[%s3843_s9 + $0x12c] ss:$16 sps:$4 sm:$0xff]   ;;  %v2992_v49 = vld [vmem:[%s3843_s9 + $0x120] ss:$16 sps:$4 sm:$0xff]  }
  0xd3   : > { %v2993_v50 = vld [vmem:[%s3843_s9 + $0x128] ss:$16 sps:$4 sm:$0xff]   ;;  %v2994_v51 = vld [vmem:[%s3843_s9 + $0x144] ss:$16 sps:$4 sm:$0xff]   ;;  %v2996_v52 = vld [vmem:[%s3843_s9 + $0x14c] ss:$16 sps:$4 sm:$0xff]  }
  0xd4   : > { %1220 = vmatpush1.bf16.msra.mxu0 %v2956_v25  ;;  %1306 = vmatpush1.bf16.msra.mxu1 %v2957_v26  ;;  %v2998_v53 = vld [vmem:[%s3843_s9 + $0x140] ss:$16 sps:$4 sm:$0xff]   ;;  %v2999_v54 = vld [vmem:[%s3843_s9 + $0x148] ss:$16 sps:$4 sm:$0xff]   ;;  %v3000_v55 = vld [vmem:[%s3843_s9 + $0x164] ss:$16 sps:$4 sm:$0xff]  }
  0xd5   : > { %1221 = vmatprep.subr.bf16.mxu0 %v2958_v27  ;;  %1307 = vmatprep.subr.bf16.mxu1 %v2960_v28  ;;  %v3002_v56 = vld [vmem:[%s3843_s9 + $0x16c] ss:$16 sps:$4 sm:$0xff]   ;;  %v3004_v57 = vld [vmem:[%s3843_s9 + $0x160] ss:$16 sps:$4 sm:$0xff]   ;;  %v3005_v58 = vld [vmem:[%s3843_s9 + $0x168] ss:$16 sps:$4 sm:$0xff]  }
  0xd6   : > { %v3032_v59 = vld [vmem:[#allocation3 + $0x4] ss:$16 sps:$4 sm:$0xff]   ;;  %v3008_v61 = vld [vmem:[%s3843_s9 + $0x18c] ss:$16 sps:$4 sm:$0xff]   ;;  %v3010_v62 = vld [vmem:[%s3843_s9 + $0x180] ss:$16 sps:$4 sm:$0xff]  }
  0xd7   : > { %v3006_v60 = vld [vmem:[%s3843_s9 + $0x184] ss:$16 sps:$4 sm:$0xff]   ;;  %1245 = vmatprep.mubr.bf16.mxu0 %v3032_v59  ;;  %1331 = vmatprep.mubr.bf16.mxu1 %v3032_v59  ;;  %v3011_v63 = vld [vmem:[%s3843_s9 + $0x188] ss:$16 sps:$4 sm:$0xff]   ;;  %v3014_v1 = vld [vmem:[%s3843_s9 + $0x1ac] ss:$16 sps:$4 sm:$0xff]  }
  0xd8   : > { %1222 = vmatpush1.bf16.msra.mxu0 %v2962_v29  ;;  %1308 = vmatpush1.bf16.msra.mxu1 %v2963_v30  ;;  %v3012_v0 = vld [vmem:[%s3843_s9 + $0x1a4] ss:$16 sps:$4 sm:$0xff]   ;;  %v3016_v2 = vld [vmem:[%s3843_s9 + $0x1a0] ss:$16 sps:$4 sm:$0xff]   ;;  %v3017_v3 = vld [vmem:[%s3843_s9 + $0x1a8] ss:$16 sps:$4 sm:$0xff]  }
  0xd9   : > { %1223 = vmatprep.subr.bf16.mxu0 %v2964_v31  ;;  %1309 = vmatprep.subr.bf16.mxu1 %v2966_v32  ;;  %v3018_v4 = vld [vmem:[%s3843_s9 + $0x1c4] ss:$16 sps:$4 sm:$0xff]   ;;  %v3020_v5 = vld [vmem:[%s3843_s9 + $0x1cc] ss:$16 sps:$4 sm:$0xff]   ;;  %v3022_v6 = vld [vmem:[%s3843_s9 + $0x1c0] ss:$16 sps:$4 sm:$0xff]  }
  0xda   : > { %v3023_v7 = vld [vmem:[%s3843_s9 + $0x1c8] ss:$16 sps:$4 sm:$0xff]   ;;  %v3024_v8 = vld [vmem:[%s3843_s9 + $0x1e4] ss:$16 sps:$4 sm:$0xff]   ;;  %v3026_v9 = vld [vmem:[%s3843_s9 + $0x1ec] ss:$16 sps:$4 sm:$0xff]  }
  0xdb   : > { %v3028_v10 = vld [vmem:[%s3843_s9 + $0x1e0] ss:$16 sps:$4 sm:$0xff]   ;;  %v3029_v11 = vld [vmem:[%s3843_s9 + $0x1e8] ss:$16 sps:$4 sm:$0xff]   ;;  %v3035_v12 = vld [vmem:[%s3843_s9 + $0x204] ss:$16 sps:$4 sm:$0xff]  }
  0xdc   : > { %1224 = vmatpush1.bf16.msra.mxu0 %v2968_v33  ;;  %1310 = vmatpush1.bf16.msra.mxu1 %v2969_v34  ;;  %v3038_v13 = vld [vmem:[%s3843_s9 + $0x20c] ss:$16 sps:$4 sm:$0xff]   ;;  %v3030_v14 = vld [vmem:[#allocation3] ss:$16 sps:$4 sm:$0xff]   ;;  %v3036_v16 = vld [vmem:[%s3843_s9 + $0x208] ss:$16 sps:$4 sm:$0xff]  }
  0xdd   : > { %1225 = vmatprep.subr.bf16.mxu0 %v2970_v35  ;;  %1311 = vmatprep.subr.bf16.mxu1 %v2972_v36  ;;  %v3033_v15 = vld [vmem:[%s3843_s9 + $0x200] ss:$16 sps:$4 sm:$0xff]   ;;  %v3041_v17 = vld [vmem:[%s3843_s9 + $0x224] ss:$16 sps:$4 sm:$0xff]   ;;  %v3044_v18 = vld [vmem:[%s3843_s9 + $0x22c] ss:$16 sps:$4 sm:$0xff]  }
  0xde   : > { %v3039_v19 = vld [vmem:[%s3843_s9 + $0x220] ss:$16 sps:$4 sm:$0xff]   ;;  %v3042_v20 = vld [vmem:[%s3843_s9 + $0x228] ss:$16 sps:$4 sm:$0xff]   ;;  %v3047_v21 = vld [vmem:[%s3843_s9 + $0x244] ss:$16 sps:$4 sm:$0xff]  }
  0xdf   : > { %v3050_v22 = vld [vmem:[%s3843_s9 + $0x24c] ss:$16 sps:$4 sm:$0xff]   ;;  %v3045_v23 = vld [vmem:[%s3843_s9 + $0x240] ss:$16 sps:$4 sm:$0xff]   ;;  %v3048_v24 = vld [vmem:[%s3843_s9 + $0x248] ss:$16 sps:$4 sm:$0xff]  }
  0xe0   : > { %1226 = vmatpush1.bf16.msra.mxu0 %v2974_v37  ;;  %1312 = vmatpush1.bf16.msra.mxu1 %v2975_v38  ;;  %v3053_v25 = vld [vmem:[%s3843_s9 + $0x264] ss:$16 sps:$4 sm:$0xff]   ;;  %v3056_v26 = vld [vmem:[%s3843_s9 + $0x26c] ss:$16 sps:$4 sm:$0xff]   ;;  %v3051_v27 = vld [vmem:[%s3843_s9 + $0x260] ss:$16 sps:$4 sm:$0xff]  }
  0xe1   : > { %1227 = vmatprep.subr.bf16.mxu0 %v2976_v39  ;;  %1313 = vmatprep.subr.bf16.mxu1 %v2978_v40  ;;  %v3054_v28 = vld [vmem:[%s3843_s9 + $0x268] ss:$16 sps:$4 sm:$0xff]   ;;  %v3059_v29 = vld [vmem:[%s3843_s9 + $0x284] ss:$16 sps:$4 sm:$0xff]   ;;  %v3062_v30 = vld [vmem:[%s3843_s9 + $0x28c] ss:$16 sps:$4 sm:$0xff]  }
  0xe2   : > { %v3057_v31 = vld [vmem:[%s3843_s9 + $0x280] ss:$16 sps:$4 sm:$0xff]   ;;  %v3060_v32 = vld [vmem:[%s3843_s9 + $0x288] ss:$16 sps:$4 sm:$0xff]   ;;  %v3065_v33 = vld [vmem:[%s3843_s9 + $0x2a4] ss:$16 sps:$4 sm:$0xff]  }
  0xe3   : > { %v3068_v34 = vld [vmem:[%s3843_s9 + $0x2ac] ss:$16 sps:$4 sm:$0xff]   ;;  %v3063_v35 = vld [vmem:[%s3843_s9 + $0x2a0] ss:$16 sps:$4 sm:$0xff]   ;;  %v3066_v36 = vld [vmem:[%s3843_s9 + $0x2a8] ss:$16 sps:$4 sm:$0xff]  }
  0xe4   : > { %1228 = vmatpush1.bf16.msra.mxu0 %v2980_v41  ;;  %1314 = vmatpush1.bf16.msra.mxu1 %v2981_v42  ;;  %v3071_v37 = vld [vmem:[%s3843_s9 + $0x2c4] ss:$16 sps:$4 sm:$0xff]   ;;  %v3074_v38 = vld [vmem:[%s3843_s9 + $0x2cc] ss:$16 sps:$4 sm:$0xff]   ;;  %v3069_v39 = vld [vmem:[%s3843_s9 + $0x2c0] ss:$16 sps:$4 sm:$0xff]  }
  0xe5   : > { %1229 = vmatprep.subr.bf16.mxu0 %v2982_v43  ;;  %1315 = vmatprep.subr.bf16.mxu1 %v2984_v44  ;;  %v3072_v40 = vld [vmem:[%s3843_s9 + $0x2c8] ss:$16 sps:$4 sm:$0xff]   ;;  %v3131_v41 = vld [vmem:[#allocation3 + $0xc] ss:$16 sps:$4 sm:$0xff]   ;;  %v3077_v42 = vld [vmem:[%s3843_s9 + $0x2e4] ss:$16 sps:$4 sm:$0xff]  }
  0xe6   : > { %v3080_v43 = vld [vmem:[%s3843_s9 + $0x2ec] ss:$16 sps:$4 sm:$0xff]   ;;  %v3075_v44 = vld [vmem:[%s3843_s9 + $0x2e0] ss:$16 sps:$4 sm:$0xff]   ;;  %s4215_s26 = sld [smem:[#allocation18_spill]] }
  0xe7   : > { %v3104_v59 = vld [vmem:[%s3843_s9 + $0x36c] ss:$16 sps:$4 sm:$0xff]  }
  0xe8   : > { %1230 = vmatpush1.bf16.msra.mxu0 %v2986_v45  ;;  %1316 = vmatpush1.bf16.msra.mxu1 %v2987_v46  ;;  %v3078_v45 = vld [vmem:[%s3843_s9 + $0x2e8] ss:$16 sps:$4 sm:$0xff]   ;;  %v3083_v46 = vld [vmem:[%s3843_s9 + $0x304] ss:$16 sps:$4 sm:$0xff]  }
  0xe9   : > { %1231 = vmatprep.subr.bf16.mxu0 %v2988_v47  ;;  %1317 = vmatprep.subr.bf16.mxu1 %v2990_v48  ;;  %v3086_v47 = vld [vmem:[%s3843_s9 + $0x30c] ss:$16 sps:$4 sm:$0xff]   ;;  %v3081_v48 = vld [vmem:[%s3843_s9 + $0x300] ss:$16 sps:$4 sm:$0xff]  }
  0xec   : > { %1232 = vmatpush1.bf16.msra.mxu0 %v2992_v49  ;;  %1318 = vmatpush1.bf16.msra.mxu1 %v2993_v50  ;;  %v3084_v49 = vld [vmem:[%s3843_s9 + $0x308] ss:$16 sps:$4 sm:$0xff]   ;;  %v3089_v50 = vld [vmem:[%s3843_s9 + $0x324] ss:$16 sps:$4 sm:$0xff]   ;;  %p2803_p12 = scmp.ne.s32.totalorder %s4215_s26, 3 }
  0xed   : > { %1233 = vmatprep.subr.bf16.mxu0 %v2994_v51  ;;  %1319 = vmatprep.subr.bf16.mxu1 %v2996_v52  ;;  %v3092_v51 = vld [vmem:[%s3843_s9 + $0x32c] ss:$16 sps:$4 sm:$0xff]   ;;  %v3087_v52 = vld [vmem:[%s3843_s9 + $0x320] ss:$16 sps:$4 sm:$0xff]  }
  0xf0   : > { %1234 = vmatpush1.bf16.msra.mxu0 %v2998_v53  ;;  %1320 = vmatpush1.bf16.msra.mxu1 %v2999_v54  ;;  %v3090_v53 = vld [vmem:[%s3843_s9 + $0x328] ss:$16 sps:$4 sm:$0xff]   ;;  %v3095_v54 = vld [vmem:[%s3843_s9 + $0x344] ss:$16 sps:$4 sm:$0xff]  }
  0xf1   : > { %1235 = vmatprep.subr.bf16.mxu0 %v3000_v55  ;;  %1321 = vmatprep.subr.bf16.mxu1 %v3002_v56  ;;  %v3098_v55 = vld [vmem:[%s3843_s9 + $0x34c] ss:$16 sps:$4 sm:$0xff]   ;;  %v3093_v56 = vld [vmem:[%s3843_s9 + $0x340] ss:$16 sps:$4 sm:$0xff]  }
  0xf4   : > { %1236 = vmatpush1.bf16.msra.mxu0 %v3004_v57  ;;  %1322 = vmatpush1.bf16.msra.mxu1 %v3005_v58  ;;  %v3096_v57 = vld [vmem:[%s3843_s9 + $0x348] ss:$16 sps:$4 sm:$0xff]   ;;  %v3101_v58 = vld [vmem:[%s3843_s9 + $0x364] ss:$16 sps:$4 sm:$0xff]  }
  0xf5   : > { %1237 = vmatprep.subr.bf16.mxu0 %v3006_v60  ;;  %1323 = vmatprep.subr.bf16.mxu1 %v3008_v61  ;;  %v3099_v60 = vld [vmem:[%s3843_s9 + $0x360] ss:$16 sps:$4 sm:$0xff]   ;;  %v3102_v61 = vld [vmem:[%s3843_s9 + $0x368] ss:$16 sps:$4 sm:$0xff]  }
  0xf8   : > { %1238 = vmatpush1.bf16.msra.mxu0 %v3010_v62  ;;  %1324 = vmatpush1.bf16.msra.mxu1 %v3011_v63  ;;  %v3107_v62 = vld [vmem:[%s3843_s9 + $0x384] ss:$16 sps:$4 sm:$0xff]   ;;  %v3110_v63 = vld [vmem:[%s3843_s9 + $0x38c] ss:$16 sps:$4 sm:$0xff]  }
  0xf9   : > { %1239 = vmatprep.subr.bf16.mxu0 %v3012_v0  ;;  %1325 = vmatprep.subr.bf16.mxu1 %v3014_v1  ;;  %v3105_v0 = vld [vmem:[%s3843_s9 + $0x380] ss:$16 sps:$4 sm:$0xff]   ;;  %v3108_v1 = vld [vmem:[%s3843_s9 + $0x388] ss:$16 sps:$4 sm:$0xff]  }
  0xfc   : > { %1240 = vmatpush1.bf16.msra.mxu0 %v3016_v2  ;;  %1326 = vmatpush1.bf16.msra.mxu1 %v3017_v3  ;;  %v3113_v2 = vld [vmem:[%s3843_s9 + $0x3a4] ss:$16 sps:$4 sm:$0xff]   ;;  %v3116_v3 = vld [vmem:[%s3843_s9 + $0x3ac] ss:$16 sps:$4 sm:$0xff]  }
  0xfd   : > { %1241 = vmatprep.subr.bf16.mxu0 %v3018_v4  ;;  %1327 = vmatprep.subr.bf16.mxu1 %v3020_v5  ;;  %v3111_v4 = vld [vmem:[%s3843_s9 + $0x3a0] ss:$16 sps:$4 sm:$0xff]   ;;  %v3114_v5 = vld [vmem:[%s3843_s9 + $0x3a8] ss:$16 sps:$4 sm:$0xff]  }
 0x100   : > { %1242 = vmatpush1.bf16.msra.mxu0 %v3022_v6  ;;  %1328 = vmatpush1.bf16.msra.mxu1 %v3023_v7  ;;  %v3119_v6 = vld [vmem:[%s3843_s9 + $0x3c4] ss:$16 sps:$4 sm:$0xff]   ;;  %v3122_v7 = vld [vmem:[%s3843_s9 + $0x3cc] ss:$16 sps:$4 sm:$0xff]  }
 0x101   : > { %1243 = vmatprep.subr.bf16.mxu0 %v3024_v8  ;;  %1329 = vmatprep.subr.bf16.mxu1 %v3026_v9  ;;  %v3117_v8 = vld [vmem:[%s3843_s9 + $0x3c0] ss:$16 sps:$4 sm:$0xff]   ;;  %v3120_v9 = vld [vmem:[%s3843_s9 + $0x3c8] ss:$16 sps:$4 sm:$0xff]  }
 0x104   : > { %1244 = vmatpush1.bf16.msra.mxu0 %v3028_v10  ;;  %1330 = vmatpush1.bf16.msra.mxu1 %v3029_v11  ;;  %v3125_v10 = vld [vmem:[%s3843_s9 + $0x3e4] ss:$16 sps:$4 sm:$0xff]   ;;  %v3128_v11 = vld [vmem:[%s3843_s9 + $0x3ec] ss:$16 sps:$4 sm:$0xff]  }
 0x105   : > { %1256 = vmatprep.subr.bf16.mxu0 %v3035_v12  ;;  %1342 = vmatprep.subr.bf16.mxu1 %v3038_v13  ;;  %v3123_v12 = vld [vmem:[%s3843_s9 + $0x3e0] ss:$16 sps:$4 sm:$0xff]   ;;  %v3126_v13 = vld [vmem:[%s3843_s9 + $0x3e8] ss:$16 sps:$4 sm:$0xff]  }
 0x107   : > { %1246 = vmatmul.mubr.bf16.vlgmr.msra.gmra.mrb[0].mxu0 %v3030_v14  ;;  %1332 = vmatmul.mubr.bf16.vlgmr.msra.gmra.mrb[0].mxu1 %v3030_v14  ;;  %v3129_v14 = vld [vmem:[#allocation3 + $0x8] ss:$16 sps:$4 sm:$0xff]  }
 0x108   : > { %1257 = vmatpush1.bf16.msra.mxu0 %v3033_v15  ;;  %1343 = vmatpush1.bf16.msra.mxu1 %v3036_v16  ;;  %v3134_v15 = vld [vmem:[%s3852_s16 + $0x4] ss:$16 sps:$4 sm:$0xff]   ;;  %v3137_v16 = vld [vmem:[%s3852_s16 + $0xc] ss:$16 sps:$4 sm:$0xff]  }
 0x109   : > { %1258 = vmatprep.subr.bf16.mxu0 %v3041_v17  ;;  %1344 = vmatprep.subr.bf16.mxu1 %v3044_v18  ;;  %v3132_v17 = vld [vmem:[%s3852_s16] ss:$16 sps:$4 sm:$0xff]   ;;  %v3135_v18 = vld [vmem:[%s3852_s16 + $0x8] ss:$16 sps:$4 sm:$0xff]  }
 0x10a   : > { %1288 = vmatprep.mubr.bf16.mxu0 %v3131_v41  ;;  %1374 = vmatprep.mubr.bf16.mxu1 %v3131_v41  ;;  %v3168_v41 = vld [vmem:[%s3852_s16 + $0xc0] ss:$16 sps:$4 sm:$0xff]  }
 0x10c   : > { %1259 = vmatpush1.bf16.msra.mxu0 %v3039_v19  ;;  %1345 = vmatpush1.bf16.msra.mxu1 %v3042_v20  ;;  %v3140_v19 = vld [vmem:[%s3852_s16 + $0x24] ss:$16 sps:$4 sm:$0xff]   ;;  %v3143_v20 = vld [vmem:[%s3852_s16 + $0x2c] ss:$16 sps:$4 sm:$0xff]  }
 0x10d   : > { %1260 = vmatprep.subr.bf16.mxu0 %v3047_v21  ;;  %1346 = vmatprep.subr.bf16.mxu1 %v3050_v22  ;;  %v3138_v21 = vld [vmem:[%s3852_s16 + $0x20] ss:$16 sps:$4 sm:$0xff]   ;;  %v3141_v22 = vld [vmem:[%s3852_s16 + $0x28] ss:$16 sps:$4 sm:$0xff]  }
 0x110   : > { %1261 = vmatpush1.bf16.msra.mxu0 %v3045_v23  ;;  %1347 = vmatpush1.bf16.msra.mxu1 %v3048_v24  ;;  %v3146_v23 = vld [vmem:[%s3852_s16 + $0x44] ss:$16 sps:$4 sm:$0xff]   ;;  %v3149_v24 = vld [vmem:[%s3852_s16 + $0x4c] ss:$16 sps:$4 sm:$0xff]  }
 0x111   : > { %1262 = vmatprep.subr.bf16.mxu0 %v3053_v25  ;;  %1348 = vmatprep.subr.bf16.mxu1 %v3056_v26  ;;  %v3144_v25 = vld [vmem:[%s3852_s16 + $0x40] ss:$16 sps:$4 sm:$0xff]   ;;  %v3147_v26 = vld [vmem:[%s3852_s16 + $0x48] ss:$16 sps:$4 sm:$0xff]  }
 0x114   : > { %1263 = vmatpush1.bf16.msra.mxu0 %v3051_v27  ;;  %1349 = vmatpush1.bf16.msra.mxu1 %v3054_v28  ;;  %v3152_v27 = vld [vmem:[%s3852_s16 + $0x64] ss:$16 sps:$4 sm:$0xff]   ;;  %v3155_v28 = vld [vmem:[%s3852_s16 + $0x6c] ss:$16 sps:$4 sm:$0xff]  }
 0x115   : > { %1264 = vmatprep.subr.bf16.mxu0 %v3059_v29  ;;  %1350 = vmatprep.subr.bf16.mxu1 %v3062_v30  ;;  %v3150_v29 = vld [vmem:[%s3852_s16 + $0x60] ss:$16 sps:$4 sm:$0xff]   ;;  %v3153_v30 = vld [vmem:[%s3852_s16 + $0x68] ss:$16 sps:$4 sm:$0xff]  }
 0x118   : > { %1265 = vmatpush1.bf16.msra.mxu0 %v3057_v31  ;;  %1351 = vmatpush1.bf16.msra.mxu1 %v3060_v32  ;;  %v3158_v31 = vld [vmem:[%s3852_s16 + $0x84] ss:$16 sps:$4 sm:$0xff]   ;;  %v3161_v32 = vld [vmem:[%s3852_s16 + $0x8c] ss:$16 sps:$4 sm:$0xff]  }
 0x119   : > { %1266 = vmatprep.subr.bf16.mxu0 %v3065_v33  ;;  %1352 = vmatprep.subr.bf16.mxu1 %v3068_v34  ;;  %v3156_v33 = vld [vmem:[%s3852_s16 + $0x80] ss:$16 sps:$4 sm:$0xff]   ;;  %v3159_v34 = vld [vmem:[%s3852_s16 + $0x88] ss:$16 sps:$4 sm:$0xff]  }
 0x11c   : > { %1267 = vmatpush1.bf16.msra.mxu0 %v3063_v35  ;;  %1353 = vmatpush1.bf16.msra.mxu1 %v3066_v36  ;;  %v3164_v35 = vld [vmem:[%s3852_s16 + $0xa4] ss:$16 sps:$4 sm:$0xff]   ;;  %v3167_v36 = vld [vmem:[%s3852_s16 + $0xac] ss:$16 sps:$4 sm:$0xff]  }
 0x11d   : > { %1268 = vmatprep.subr.bf16.mxu0 %v3071_v37  ;;  %1354 = vmatprep.subr.bf16.mxu1 %v3074_v38  ;;  %v3162_v37 = vld [vmem:[%s3852_s16 + $0xa0] ss:$16 sps:$4 sm:$0xff]   ;;  %v3165_v38 = vld [vmem:[%s3852_s16 + $0xa8] ss:$16 sps:$4 sm:$0xff]  }
 0x120   : > { %1269 = vmatpush1.bf16.msra.mxu0 %v3069_v39  ;;  %1355 = vmatpush1.bf16.msra.mxu1 %v3072_v40  ;;  %v3170_v39 = vld [vmem:[%s3852_s16 + $0xc4] ss:$16 sps:$4 sm:$0xff]   ;;  %v3173_v40 = vld [vmem:[%s3852_s16 + $0xcc] ss:$16 sps:$4 sm:$0xff]  }
 0x121   : > { %1270 = vmatprep.subr.bf16.mxu0 %v3077_v42  ;;  %1356 = vmatprep.subr.bf16.mxu1 %v3080_v43  ;;  %v3171_v42 = vld [vmem:[%s3852_s16 + $0xc8] ss:$16 sps:$4 sm:$0xff]   ;;  %v3176_v43 = vld [vmem:[%s3852_s16 + $0xe4] ss:$16 sps:$4 sm:$0xff]  }
 0x124   : > { %1271 = vmatpush1.bf16.msra.mxu0 %v3075_v44  ;;  %1357 = vmatpush1.bf16.msra.mxu1 %v3078_v45  ;;  %v3179_v44 = vld [vmem:[%s3852_s16 + $0xec] ss:$16 sps:$4 sm:$0xff]   ;;  %v3174_v45 = vld [vmem:[%s3852_s16 + $0xe0] ss:$16 sps:$4 sm:$0xff]  }
 0x125   : > { %1272 = vmatprep.subr.bf16.mxu0 %v3083_v46  ;;  %1358 = vmatprep.subr.bf16.mxu1 %v3086_v47  ;;  %v3177_v46 = vld [vmem:[%s3852_s16 + $0xe8] ss:$16 sps:$4 sm:$0xff]   ;;  %v3182_v47 = vld [vmem:[%s3852_s16 + $0x104] ss:$16 sps:$4 sm:$0xff]  }
 0x128   : > { %1273 = vmatpush1.bf16.msra.mxu0 %v3081_v48  ;;  %1359 = vmatpush1.bf16.msra.mxu1 %v3084_v49  ;;  %v3185_v48 = vld [vmem:[%s3852_s16 + $0x10c] ss:$16 sps:$4 sm:$0xff]   ;;  %v3180_v49 = vld [vmem:[%s3852_s16 + $0x100] ss:$16 sps:$4 sm:$0xff]  }
 0x129   : > { %1274 = vmatprep.subr.bf16.mxu0 %v3089_v50  ;;  %1360 = vmatprep.subr.bf16.mxu1 %v3092_v51  ;;  %v3183_v50 = vld [vmem:[%s3852_s16 + $0x108] ss:$16 sps:$4 sm:$0xff]   ;;  %v3188_v51 = vld [vmem:[%s3852_s16 + $0x124] ss:$16 sps:$4 sm:$0xff]  }
 0x12c   : > { %1275 = vmatpush1.bf16.msra.mxu0 %v3087_v52  ;;  %1361 = vmatpush1.bf16.msra.mxu1 %v3090_v53  ;;  %v3191_v52 = vld [vmem:[%s3852_s16 + $0x12c] ss:$16 sps:$4 sm:$0xff]   ;;  %v3186_v53 = vld [vmem:[%s3852_s16 + $0x120] ss:$16 sps:$4 sm:$0xff]  }
 0x12d   : > { %1276 = vmatprep.subr.bf16.mxu0 %v3095_v54  ;;  %1362 = vmatprep.subr.bf16.mxu1 %v3098_v55  ;;  %v3189_v54 = vld [vmem:[%s3852_s16 + $0x128] ss:$16 sps:$4 sm:$0xff]   ;;  %v3194_v55 = vld [vmem:[%s3852_s16 + $0x144] ss:$16 sps:$4 sm:$0xff]  }
 0x130   : > { %1277 = vmatpush1.bf16.msra.mxu0 %v3093_v56  ;;  %1363 = vmatpush1.bf16.msra.mxu1 %v3096_v57  ;;  %v3197_v56 = vld [vmem:[%s3852_s16 + $0x14c] ss:$16 sps:$4 sm:$0xff]   ;;  %v3192_v57 = vld [vmem:[%s3852_s16 + $0x140] ss:$16 sps:$4 sm:$0xff]  }
 0x131   : > { %1278 = vmatprep.subr.bf16.mxu0 %v3101_v58  ;;  %1364 = vmatprep.subr.bf16.mxu1 %v3104_v59  ;;  %v3195_v58 = vld [vmem:[%s3852_s16 + $0x148] ss:$16 sps:$4 sm:$0xff]   ;;  %v3200_v59 = vld [vmem:[%s3852_s16 + $0x164] ss:$16 sps:$4 sm:$0xff]  }
 0x134   : > { %1279 = vmatpush1.bf16.msra.mxu0 %v3099_v60  ;;  %1365 = vmatpush1.bf16.msra.mxu1 %v3102_v61  ;;  %v3203_v60 = vld [vmem:[%s3852_s16 + $0x16c] ss:$16 sps:$4 sm:$0xff]   ;;  %v3198_v61 = vld [vmem:[%s3852_s16 + $0x160] ss:$16 sps:$4 sm:$0xff]  }
 0x135   : > { %1280 = vmatprep.subr.bf16.mxu0 %v3107_v62  ;;  %1366 = vmatprep.subr.bf16.mxu1 %v3110_v63  ;;  %v3201_v62 = vld [vmem:[%s3852_s16 + $0x168] ss:$16 sps:$4 sm:$0xff]   ;;  %v3206_v63 = vld [vmem:[%s3852_s16 + $0x184] ss:$16 sps:$4 sm:$0xff]  }
 0x138   : > { %1281 = vmatpush1.bf16.msra.mxu0 %v3105_v0  ;;  %1367 = vmatpush1.bf16.msra.mxu1 %v3108_v1  ;;  %v3209_v0 = vld [vmem:[%s3852_s16 + $0x18c] ss:$16 sps:$4 sm:$0xff]   ;;  %v3204_v1 = vld [vmem:[%s3852_s16 + $0x180] ss:$16 sps:$4 sm:$0xff]  }
 0x139   : > { %1282 = vmatprep.subr.bf16.mxu0 %v3113_v2  ;;  %1368 = vmatprep.subr.bf16.mxu1 %v3116_v3  ;;  %v3207_v2 = vld [vmem:[%s3852_s16 + $0x188] ss:$16 sps:$4 sm:$0xff]   ;;  %v3212_v3 = vld [vmem:[%s3852_s16 + $0x1a4] ss:$16 sps:$4 sm:$0xff]  }
 0x13c   : > { %1283 = vmatpush1.bf16.msra.mxu0 %v3111_v4  ;;  %1369 = vmatpush1.bf16.msra.mxu1 %v3114_v5  ;;  %v3215_v4 = vld [vmem:[%s3852_s16 + $0x1ac] ss:$16 sps:$4 sm:$0xff]   ;;  %v3210_v5 = vld [vmem:[%s3852_s16 + $0x1a0] ss:$16 sps:$4 sm:$0xff]  }
 0x13d   : > { %1284 = vmatprep.subr.bf16.mxu0 %v3119_v6  ;;  %1370 = vmatprep.subr.bf16.mxu1 %v3122_v7  ;;  %v3213_v6 = vld [vmem:[%s3852_s16 + $0x1a8] ss:$16 sps:$4 sm:$0xff]   ;;  %v3218_v7 = vld [vmem:[%s3852_s16 + $0x1c4] ss:$16 sps:$4 sm:$0xff]  }
 0x140   : > { %1285 = vmatpush1.bf16.msra.mxu0 %v3117_v8  ;;  %1371 = vmatpush1.bf16.msra.mxu1 %v3120_v9  ;;  %v3221_v8 = vld [vmem:[%s3852_s16 + $0x1cc] ss:$16 sps:$4 sm:$0xff]   ;;  %v3216_v9 = vld [vmem:[%s3852_s16 + $0x1c0] ss:$16 sps:$4 sm:$0xff]  }
 0x141   : > { %1286 = vmatprep.subr.bf16.mxu0 %v3125_v10  ;;  %1372 = vmatprep.subr.bf16.mxu1 %v3128_v11  ;;  %v3219_v10 = vld [vmem:[%s3852_s16 + $0x1c8] ss:$16 sps:$4 sm:$0xff]   ;;  %v3224_v11 = vld [vmem:[%s3852_s16 + $0x1e4] ss:$16 sps:$4 sm:$0xff]  }
 0x144   : > { %1287 = vmatpush1.bf16.msra.mxu0 %v3123_v12  ;;  %1373 = vmatpush1.bf16.msra.mxu1 %v3126_v13  ;;  %v3227_v12 = vld [vmem:[%s3852_s16 + $0x1ec] ss:$16 sps:$4 sm:$0xff]   ;;  %v3222_v13 = vld [vmem:[%s3852_s16 + $0x1e0] ss:$16 sps:$4 sm:$0xff]  }
 0x145   : > { %2173 = vmatprep.subr.bf16.mxu0 %v3134_v15  ;;  %2259 = vmatprep.subr.bf16.mxu1 %v3137_v16  ;;  %v3230_v15 = vld [vmem:[%s3852_s16 + $0x204] ss:$16 sps:$4 sm:$0xff]   ;;  %v3233_v16 = vld [vmem:[%s3852_s16 + $0x20c] ss:$16 sps:$4 sm:$0xff]  }
 0x147   : > { %1289 = vmatmul.mubr.bf16.vlgmr.msra.gmra.mrb[0].mxu0 %v3129_v14  ;;  %1375 = vmatmul.mubr.bf16.vlgmr.msra.gmra.mrb[0].mxu1 %v3129_v14  ;;  %v3225_v14 = vld [vmem:[%s3852_s16 + $0x1e8] ss:$16 sps:$4 sm:$0xff]  }
 0x148   : > { %2174 = vmatpush1.bf16.msra.mxu0 %v3132_v17  ;;  %2260 = vmatpush1.bf16.msra.mxu1 %v3135_v18  ;;  %v533_v17 = vlaneseq }
 0x149   : > { %2175 = vmatprep.subr.bf16.mxu0 %v3140_v19  ;;  %2261 = vmatprep.subr.bf16.mxu1 %v3143_v20 }
 0x14a   : > { %v534_v18 = vshrl.u32 %v533_v17, 7  ;;  %v3267_v17 = vld [vmem:[%s3852_s16 + $0x2c8] ss:$16 sps:$4 sm:$0xff]  }
 0x14c   : > { %2176 = vmatpush1.bf16.msra.mxu0 %v3138_v21  ;;  %2262 = vmatpush1.bf16.msra.mxu1 %v3141_v22  ;;  %v535_v19 = vsub.s32 0, %v534_v18  ;;  %v543_v20 = vsub.s32 2, %v534_v18  ;;  %v531_v21 = vld [vmem:[%s315_s29] sm:$0xf]  ;;  %v539_v22 = vsub.s32 1, %v534_v18 }
 0x14d   : > { %2177 = vmatprep.subr.bf16.mxu0 %v3146_v23  ;;  %2263 = vmatprep.subr.bf16.mxu1 %v3149_v24  ;;  %v547_v23 = vsub.s32 3, %v534_v18  ;;  %v3272_v18 = vld [vmem:[%s3852_s16 + $0x2e4] ss:$16 sps:$4 sm:$0xff]  }
 0x14e   : > { %v536_v24 = vrot.slane %v531_v21, %v535_v19  ;;  %v3275_v19 = vld [vmem:[%s3852_s16 + $0x2ec] ss:$16 sps:$4 sm:$0xff]  }
 0x150   : > { %2178 = vmatpush1.bf16.msra.mxu0 %v3144_v25  ;;  %2264 = vmatpush1.bf16.msra.mxu1 %v3147_v26  ;;  %v544_v25 = vrot.slane %v531_v21, %v543_v20  ;;  %v540_v26 = vrot.slane %v531_v21, %v539_v22  ;;  %v3270_v20 = vld [vmem:[%s3852_s16 + $0x2e0] ss:$16 sps:$4 sm:$0xff]   ;;  %v3278_v22 = vld [vmem:[%s3852_s16 + $0x304] ss:$16 sps:$4 sm:$0xff]  }
 0x151   : > { %2179 = vmatprep.subr.bf16.mxu0 %v3152_v27  ;;  %2265 = vmatprep.subr.bf16.mxu1 %v3155_v28  ;;  %v548_v27 = vrot.slane %v531_v21, %v547_v23  ;;  %v3273_v21 = vld [vmem:[%s3852_s16 + $0x2e8] ss:$16 sps:$4 sm:$0xff]   ;;  %v3281_v23 = vld [vmem:[%s3852_s16 + $0x30c] ss:$16 sps:$4 sm:$0xff]  }
 0x154   : > { %2180 = vmatpush1.bf16.msra.mxu0 %v3150_v29  ;;  %2266 = vmatpush1.bf16.msra.mxu1 %v3153_v30 }
 0x155   : > { %2181 = vmatprep.subr.bf16.mxu0 %v3158_v31  ;;  %2267 = vmatprep.subr.bf16.mxu1 %v3161_v32 }
 0x158   : > { %2182 = vmatpush1.bf16.msra.mxu0 %v3156_v33  ;;  %2268 = vmatpush1.bf16.msra.mxu1 %v3159_v34 }
 0x159   : > { %2183 = vmatprep.subr.bf16.mxu0 %v3164_v35  ;;  %2269 = vmatprep.subr.bf16.mxu1 %v3167_v36 }
 0x15c   : > { %2184 = vmatpush1.bf16.msra.mxu0 %v3162_v37  ;;  %2270 = vmatpush1.bf16.msra.mxu1 %v3165_v38 }
 0x15d   : > { %2185 = vmatprep.subr.bf16.mxu0 %v3170_v39  ;;  %2271 = vmatprep.subr.bf16.mxu1 %v3173_v40 }
 0x160   : > { %2186 = vmatpush1.bf16.msra.mxu0 %v3168_v41  ;;  %2272 = vmatpush1.bf16.msra.mxu1 %v3171_v42 }
 0x161   : > { %2187 = vmatprep.subr.bf16.mxu0 %v3176_v43  ;;  %2273 = vmatprep.subr.bf16.mxu1 %v3179_v44 }
 0x164   : > { %2188 = vmatpush1.bf16.msra.mxu0 %v3174_v45  ;;  %2274 = vmatpush1.bf16.msra.mxu1 %v3177_v46 }
 0x165   : > { %2189 = vmatprep.subr.bf16.mxu0 %v3182_v47  ;;  %2275 = vmatprep.subr.bf16.mxu1 %v3185_v48 }
 0x168   : > { %2190 = vmatpush1.bf16.msra.mxu0 %v3180_v49  ;;  %2276 = vmatpush1.bf16.msra.mxu1 %v3183_v50 }
 0x169   : > { %2191 = vmatprep.subr.bf16.mxu0 %v3188_v51  ;;  %2277 = vmatprep.subr.bf16.mxu1 %v3191_v52 }
 0x16c   : > { %2192 = vmatpush1.bf16.msra.mxu0 %v3186_v53  ;;  %2278 = vmatpush1.bf16.msra.mxu1 %v3189_v54 }
 0x16d   : > { %2193 = vmatprep.subr.bf16.mxu0 %v3194_v55  ;;  %2279 = vmatprep.subr.bf16.mxu1 %v3197_v56  ;;  %v3228_v56 = vld [vmem:[%s3852_s16 + $0x200] ss:$16 sps:$4 sm:$0xff]  }
 0x170   : > { %2194 = vmatpush1.bf16.msra.mxu0 %v3192_v57  ;;  %2280 = vmatpush1.bf16.msra.mxu1 %v3195_v58  ;;  %v3231_v57 = vld [vmem:[%s3852_s16 + $0x208] ss:$16 sps:$4 sm:$0xff]   ;;  %v3236_v58 = vld [vmem:[%s3852_s16 + $0x224] ss:$16 sps:$4 sm:$0xff]  }
 0x171   : > { %2195 = vmatprep.subr.bf16.mxu0 %v3200_v59  ;;  %2281 = vmatprep.subr.bf16.mxu1 %v3203_v60  ;;  %v3239_v59 = vld [vmem:[%s3852_s16 + $0x22c] ss:$16 sps:$4 sm:$0xff]   ;;  %v3234_v60 = vld [vmem:[%s3852_s16 + $0x220] ss:$16 sps:$4 sm:$0xff]  }
 0x174   : > { %2196 = vmatpush1.bf16.msra.mxu0 %v3198_v61  ;;  %2282 = vmatpush1.bf16.msra.mxu1 %v3201_v62  ;;  %v3237_v61 = vld [vmem:[%s3852_s16 + $0x228] ss:$16 sps:$4 sm:$0xff]   ;;  %v3242_v62 = vld [vmem:[%s3852_s16 + $0x244] ss:$16 sps:$4 sm:$0xff]  }
 0x175   : > { %2197 = vmatprep.subr.bf16.mxu0 %v3206_v63  ;;  %2283 = vmatprep.subr.bf16.mxu1 %v3209_v0  ;;  %v3245_v63 = vld [vmem:[%s3852_s16 + $0x24c] ss:$16 sps:$4 sm:$0xff]   ;;  %v3240_v0 = vld [vmem:[%s3852_s16 + $0x240] ss:$16 sps:$4 sm:$0xff]  }
 0x178   : > { %2198 = vmatpush1.bf16.msra.mxu0 %v3204_v1  ;;  %2284 = vmatpush1.bf16.msra.mxu1 %v3207_v2  ;;  %v3243_v1 = vld [vmem:[%s3852_s16 + $0x248] ss:$16 sps:$4 sm:$0xff]   ;;  %v3248_v2 = vld [vmem:[%s3852_s16 + $0x264] ss:$16 sps:$4 sm:$0xff]  }
 0x179   : > { %2199 = vmatprep.subr.bf16.mxu0 %v3212_v3  ;;  %2285 = vmatprep.subr.bf16.mxu1 %v3215_v4  ;;  %v3251_v3 = vld [vmem:[%s3852_s16 + $0x26c] ss:$16 sps:$4 sm:$0xff]   ;;  %v3246_v4 = vld [vmem:[%s3852_s16 + $0x260] ss:$16 sps:$4 sm:$0xff]  }
 0x17c   : > { %2200 = vmatpush1.bf16.msra.mxu0 %v3210_v5  ;;  %2286 = vmatpush1.bf16.msra.mxu1 %v3213_v6  ;;  %v3249_v5 = vld [vmem:[%s3852_s16 + $0x268] ss:$16 sps:$4 sm:$0xff]   ;;  %v3254_v6 = vld [vmem:[%s3852_s16 + $0x284] ss:$16 sps:$4 sm:$0xff]  }
 0x17d   : > { %2201 = vmatprep.subr.bf16.mxu0 %v3218_v7  ;;  %2287 = vmatprep.subr.bf16.mxu1 %v3221_v8  ;;  %v3257_v7 = vld [vmem:[%s3852_s16 + $0x28c] ss:$16 sps:$4 sm:$0xff]   ;;  %v3252_v8 = vld [vmem:[%s3852_s16 + $0x280] ss:$16 sps:$4 sm:$0xff]  }
 0x180   : > { %2202 = vmatpush1.bf16.msra.mxu0 %v3216_v9  ;;  %2288 = vmatpush1.bf16.msra.mxu1 %v3219_v10  ;;  %v3255_v9 = vld [vmem:[%s3852_s16 + $0x288] ss:$16 sps:$4 sm:$0xff]   ;;  %v3260_v10 = vld [vmem:[%s3852_s16 + $0x2a4] ss:$16 sps:$4 sm:$0xff]  }
 0x181   : > { %2203 = vmatprep.subr.bf16.mxu0 %v3224_v11  ;;  %2289 = vmatprep.subr.bf16.mxu1 %v3227_v12  ;;  %v3263_v11 = vld [vmem:[%s3852_s16 + $0x2ac] ss:$16 sps:$4 sm:$0xff]   ;;  %v3258_v12 = vld [vmem:[%s3852_s16 + $0x2a0] ss:$16 sps:$4 sm:$0xff]  }
 0x184   : > { %2204 = vmatpush1.bf16.msra.mxu0 %v3222_v13  ;;  %2290 = vmatpush1.bf16.msra.mxu1 %v3225_v14  ;;  %v3261_v13 = vld [vmem:[%s3852_s16 + $0x2a8] ss:$16 sps:$4 sm:$0xff]   ;;  %v3266_v14 = vld [vmem:[%s3852_s16 + $0x2c4] ss:$16 sps:$4 sm:$0xff]  }
 0x185   : > { %2216 = vmatprep.subr.bf16.mxu0 %v3230_v15  ;;  %2302 = vmatprep.subr.bf16.mxu1 %v3233_v16  ;;  %v3269_v15 = vld [vmem:[%s3852_s16 + $0x2cc] ss:$16 sps:$4 sm:$0xff]   ;;  %v3264_v16 = vld [vmem:[%s3852_s16 + $0x2c0] ss:$16 sps:$4 sm:$0xff]  }
 0x21a   : > { %v1290_v28 = vpop.f32.mrb[0].mxu0  ;;  %v1376_v29 = vpop.f32.mrb[0].mxu1 }
 0x21b   : > { %v2812_v30 = vadd.f32 %v1290_v28, %v536_v24  ;;  %v2816_v31 = vadd.f32 %v1376_v29, %v544_v25  ;;  %v1292_v32 = vpop.f32.mrb[1].mxu0  ;;  %v1378_v33 = vpop.f32.mrb[1].mxu1  ;;  %v3282_v28 = vld [vmem:[%s3852_s16 + $0x320] ss:$16 sps:$4 sm:$0xff]   ;;  %v3285_v29 = vld [vmem:[%s3852_s16 + $0x328] ss:$16 sps:$4 sm:$0xff]  }
 0x21c   : > { %v2813_v34 = vadd.f32 %v1292_v32, %v540_v26  ;;  %v2817_v35 = vadd.f32 %v1378_v33, %v548_v27  ;;  %v1294_v36 = vpop.f32.mrb[2].mxu0  ;;  %v1380_v37 = vpop.f32.mrb[2].mxu1  ;;  %v3288_v32 = vld [vmem:[%s3852_s16 + $0x340] ss:$16 sps:$4 sm:$0xff]   ;;  %v3291_v33 = vld [vmem:[%s3852_s16 + $0x348] ss:$16 sps:$4 sm:$0xff]  }
 0x21d   : > { %v2814_v38 = vadd.f32 %v1294_v36, %v536_v24  ;;  %v2818_v39 = vadd.f32 %v1380_v37, %v544_v25  ;;  %v1296_v40 = vpop.f32.mrb[3].mxu0  ;;  %v1382_v41 = vpop.f32.mrb[3].mxu1  ;;  %v1385_v44 = vmax.f32 %v2812_v30, 0.0  ;;  %v1387_v45 = vmax.f32 %v2816_v31, 0.0  ;;  %v3276_v24 = vld [vmem:[%s3852_s16 + $0x300] ss:$16 sps:$4 sm:$0xff]  }
 0x21e   : > { %v2815_v42 = vadd.f32 %v1296_v40, %v540_v26  ;;  %v2819_v43 = vadd.f32 %v1382_v41, %v548_v27  ;;  %v1386_v48 = vmax.f32 %v2813_v34, 0.0  ;;  %v1388_v49 = vmax.f32 %v2817_v35, 0.0  ;;  %v3279_v25 = vld [vmem:[%s3852_s16 + $0x308] ss:$16 sps:$4 sm:$0xff]   ;;  %v3284_v26 = vld [vmem:[%s3852_s16 + $0x324] ss:$16 sps:$4 sm:$0xff]  }
 0x21f   : > { %v1389_v46 = vmax.f32 %v2814_v38, 0.0  ;;  %v1391_v47 = vmax.f32 %v2818_v39, 0.0  ;;  %v3287_v27 = vld [vmem:[%s3852_s16 + $0x32c] ss:$16 sps:$4 sm:$0xff]   ;;  %v3290_v30 = vld [vmem:[%s3852_s16 + $0x344] ss:$16 sps:$4 sm:$0xff]  }
 0x220   : > { %v1390_v50 = vmax.f32 %v2815_v42, 0.0  ;;  %v1392_v51 = vmax.f32 %v2819_v43, 0.0  ;;  %v3293_v31 = vld [vmem:[%s3852_s16 + $0x34c] ss:$16 sps:$4 sm:$0xff]   ;;  %v3296_v34 = vld [vmem:[%s3852_s16 + $0x364] ss:$16 sps:$4 sm:$0xff]  }
 0x221   : > { %v1401_v52 = vpack.c.bf16 %v1389_v46, %v1385_v44  ;;  %v4059_v53 = vpack.c.bf16 %v1391_v47, %v1387_v45  ;;  %v3299_v35 = vld [vmem:[%s3852_s16 + $0x36c] ss:$16 sps:$4 sm:$0xff]   ;;  %v3294_v36 = vld [vmem:[%s3852_s16 + $0x360] ss:$16 sps:$4 sm:$0xff]   ;;  %v3297_v37 = vld [vmem:[%s3852_s16 + $0x368] ss:$16 sps:$4 sm:$0xff]  }
 0x222   : > { %v1402_v54 = vpack.c.bf16 %v1390_v50, %v1386_v48  ;;  %v1404_v55 = vpack.c.bf16 %v1392_v51, %v1388_v49  ;;  %v3302_v38 = vld [vmem:[%s3852_s16 + $0x384] ss:$16 sps:$4 sm:$0xff]   ;;  %v3305_v39 = vld [vmem:[%s3852_s16 + $0x38c] ss:$16 sps:$4 sm:$0xff]   ;;  %v3300_v40 = vld [vmem:[%s3852_s16 + $0x380] ss:$16 sps:$4 sm:$0xff]  }
 0x223   : > { %v3303_v41 = vld [vmem:[%s3852_s16 + $0x388] ss:$16 sps:$4 sm:$0xff]   ;;  %v3308_v42 = vld [vmem:[%s3852_s16 + $0x3a4] ss:$16 sps:$4 sm:$0xff]   ;;  %v3311_v43 = vld [vmem:[%s3852_s16 + $0x3ac] ss:$16 sps:$4 sm:$0xff]  }
 0x224   : > { %2205 = vmatprep.mubr.bf16.mxu0 %v1402_v54  ;;  %2291 = vmatprep.mubr.bf16.mxu1 %v1402_v54  ;;  %v3306_v44 = vld [vmem:[%s3852_s16 + $0x3a0] ss:$16 sps:$4 sm:$0xff]   ;;  %v3309_v45 = vld [vmem:[%s3852_s16 + $0x3a8] ss:$16 sps:$4 sm:$0xff]   ;;  %v3314_v46 = vld [vmem:[%s3852_s16 + $0x3c4] ss:$16 sps:$4 sm:$0xff]  }
 0x225   : > { %2206 = vmatmul.mubr.bf16.vlgmr.msra.gmra.mrb[4].mxu0 %v1401_v52  ;;  %2292 = vmatmul.mubr.bf16.vlgmr.msra.gmra.mrb[4].mxu1 %v1401_v52  ;;  %v3317_v47 = vld [vmem:[%s3852_s16 + $0x3cc] ss:$16 sps:$4 sm:$0xff]   ;;  %v3312_v48 = vld [vmem:[%s3852_s16 + $0x3c0] ss:$16 sps:$4 sm:$0xff]   ;;  %v3315_v49 = vld [vmem:[%s3852_s16 + $0x3c8] ss:$16 sps:$4 sm:$0xff]  }
 0x226   : > { %2217 = vmatpush1.bf16.msra.mxu0 %v3228_v56  ;;  %2303 = vmatpush1.bf16.msra.mxu1 %v3231_v57  ;;  %v3320_v50 = vld [vmem:[%s3852_s16 + $0x3e4] ss:$16 sps:$4 sm:$0xff]   ;;  %v3323_v51 = vld [vmem:[%s3852_s16 + $0x3ec] ss:$16 sps:$4 sm:$0xff]   ;;  %v3318_v52 = vld [vmem:[%s3852_s16 + $0x3e0] ss:$16 sps:$4 sm:$0xff]  }
 0x227   : > { %2248 = vmatprep.mubr.bf16.mxu0 %v1404_v55  ;;  %2334 = vmatprep.mubr.bf16.mxu1 %v1404_v55  ;;  %v3321_v54 = vld [vmem:[%s3852_s16 + $0x3e8] ss:$16 sps:$4 sm:$0xff]   ;;  %v1394_v57 = vld [vmem:[#allocation2 + $0x8] sm:$0xff] }
 0x228   : > { %2218 = vmatprep.subr.bf16.mxu0 %v3236_v58  ;;  %2304 = vmatprep.subr.bf16.mxu1 %v3239_v59  ;;  %v1393_v55 = vld [vmem:[#allocation2] sm:$0xff]  ;;  %v1395_v56 = vld [vmem:[#allocation2 + $0x10] sm:$0xff]  ;;  %v1396_v58 = vld [vmem:[#allocation2 + $0x18] sm:$0xff] }
 0x22a   : > { %2219 = vmatpush1.bf16.msra.mxu0 %v3234_v60  ;;  %2305 = vmatpush1.bf16.msra.mxu1 %v3237_v61  ;;  %v1397_v61 = vld [vmem:[#allocation2 + $0x20] sm:$0xff] }
 0x22b   : > { %2220 = vmatprep.subr.bf16.mxu0 %v3242_v62  ;;  %2306 = vmatprep.subr.bf16.mxu1 %v3245_v63  ;;  %v1399_v62 = vld [vmem:[#allocation2 + $0x30] sm:$0xff] }
 0x22e   : > { %2221 = vmatpush1.bf16.msra.mxu0 %v3240_v0  ;;  %2307 = vmatpush1.bf16.msra.mxu1 %v3243_v1 }
 0x22f   : > { %2222 = vmatprep.subr.bf16.mxu0 %v3248_v2  ;;  %2308 = vmatprep.subr.bf16.mxu1 %v3251_v3  ;;  %v1398_v3 = vld [vmem:[#allocation2 + $0x28] sm:$0xff] }
 0x232   : > { %2223 = vmatpush1.bf16.msra.mxu0 %v3246_v4  ;;  %2309 = vmatpush1.bf16.msra.mxu1 %v3249_v5  ;;  %v1400_v4 = vld [vmem:[#allocation2 + $0x38] sm:$0xff] }
 0x233   : > { %2224 = vmatprep.subr.bf16.mxu0 %v3254_v6  ;;  %2310 = vmatprep.subr.bf16.mxu1 %v3257_v7 }
 0x236   : > { %2225 = vmatpush1.bf16.msra.mxu0 %v3252_v8  ;;  %2311 = vmatpush1.bf16.msra.mxu1 %v3255_v9 }
 0x237   : > { %2226 = vmatprep.subr.bf16.mxu0 %v3260_v10  ;;  %2312 = vmatprep.subr.bf16.mxu1 %v3263_v11 }
 0x23a   : > { %2227 = vmatpush1.bf16.msra.mxu0 %v3258_v12  ;;  %2313 = vmatpush1.bf16.msra.mxu1 %v3261_v13 }
 0x23b   : > { %2228 = vmatprep.subr.bf16.mxu0 %v3266_v14  ;;  %2314 = vmatprep.subr.bf16.mxu1 %v3269_v15 }
 0x23e   : > { %2229 = vmatpush1.bf16.msra.mxu0 %v3264_v16  ;;  %2315 = vmatpush1.bf16.msra.mxu1 %v3267_v17 }
 0x23f   : > { %2230 = vmatprep.subr.bf16.mxu0 %v3272_v18  ;;  %2316 = vmatprep.subr.bf16.mxu1 %v3275_v19 }
 0x242   : > { %2231 = vmatpush1.bf16.msra.mxu0 %v3270_v20  ;;  %2317 = vmatpush1.bf16.msra.mxu1 %v3273_v21 }
 0x243   : > { %2232 = vmatprep.subr.bf16.mxu0 %v3278_v22  ;;  %2318 = vmatprep.subr.bf16.mxu1 %v3281_v23 }
 0x246   : > { %2233 = vmatpush1.bf16.msra.mxu0 %v3276_v24  ;;  %2319 = vmatpush1.bf16.msra.mxu1 %v3279_v25 }
 0x247   : > { %2234 = vmatprep.subr.bf16.mxu0 %v3284_v26  ;;  %2320 = vmatprep.subr.bf16.mxu1 %v3287_v27 }
 0x24a   : > { %2235 = vmatpush1.bf16.msra.mxu0 %v3282_v28  ;;  %2321 = vmatpush1.bf16.msra.mxu1 %v3285_v29 }
 0x24b   : > { %2236 = vmatprep.subr.bf16.mxu0 %v3290_v30  ;;  %2322 = vmatprep.subr.bf16.mxu1 %v3293_v31 }
 0x24e   : > { %2237 = vmatpush1.bf16.msra.mxu0 %v3288_v32  ;;  %2323 = vmatpush1.bf16.msra.mxu1 %v3291_v33 }
 0x24f   : > { %2238 = vmatprep.subr.bf16.mxu0 %v3296_v34  ;;  %2324 = vmatprep.subr.bf16.mxu1 %v3299_v35 }
 0x252   : > { %2239 = vmatpush1.bf16.msra.mxu0 %v3294_v36  ;;  %2325 = vmatpush1.bf16.msra.mxu1 %v3297_v37 }
 0x253   : > { %2240 = vmatprep.subr.bf16.mxu0 %v3302_v38  ;;  %2326 = vmatprep.subr.bf16.mxu1 %v3305_v39 }
 0x256   : > { %2241 = vmatpush1.bf16.msra.mxu0 %v3300_v40  ;;  %2327 = vmatpush1.bf16.msra.mxu1 %v3303_v41 }
 0x257   : > { %2242 = vmatprep.subr.bf16.mxu0 %v3308_v42  ;;  %2328 = vmatprep.subr.bf16.mxu1 %v3311_v43 }
 0x25a   : > { %2243 = vmatpush1.bf16.msra.mxu0 %v3306_v44  ;;  %2329 = vmatpush1.bf16.msra.mxu1 %v3309_v45 }
 0x25b   : > { %2244 = vmatprep.subr.bf16.mxu0 %v3314_v46  ;;  %2330 = vmatprep.subr.bf16.mxu1 %v3317_v47 }
 0x25e   : > { %2245 = vmatpush1.bf16.msra.mxu0 %v3312_v48  ;;  %2331 = vmatpush1.bf16.msra.mxu1 %v3315_v49 }
 0x25f   : > { %2246 = vmatprep.subr.bf16.mxu0 %v3320_v50  ;;  %2332 = vmatprep.subr.bf16.mxu1 %v3323_v51 }
 0x262   : > { %2247 = vmatpush1.bf16.msra.mxu0 %v3318_v52  ;;  %2333 = vmatpush1.bf16.msra.mxu1 %v3321_v54 }
 0x265   : > { %2249 = vmatmul.mubr.bf16.vlgmr.msra.gmra.mrb[4].mxu0 %v4059_v53  ;;  %2335 = vmatmul.mubr.bf16.vlgmr.msra.gmra.mrb[4].mxu1 %v4059_v53 }
 0x338   : > { %v2250_v59 = vpop.f32.mrb[4].mxu0  ;;  %v2336_v60 = vpop.f32.mrb[4].mxu1  ;;  %2364 = sbr.rel (%p2803_p12) target bundleno = 839 (0x347), region = 68 }
 0x339   : > { %v2345_v63 = vadd.f32 %v2250_v59, %v1393_v55  ;;  %v2347_v0 = vadd.f32 %v2336_v60, %v1395_v56  ;;  %v2252_v1 = vpop.f32.mrb[5].mxu0  ;;  %v2338_v2 = vpop.f32.mrb[5].mxu1 }
 0x33a   : > { %v2346_v5 = vadd.f32 %v2252_v1, %v1394_v57  ;;  %v2348_v6 = vadd.f32 %v2338_v2, %v1396_v58  ;;  %v2254_v7 = vpop.f32.mrb[6].mxu0  ;;  %v2340_v8 = vpop.f32.mrb[6].mxu1 }
 0x33b   : > { %2353 = vst [vmem:[#allocation2] sm:$0xff] %v2345_v63  ;;  %2355 = vst [vmem:[#allocation2 + $0x10] sm:$0xff] %v2347_v0  ;;  %v2349_v53 = vadd.f32 %v2254_v7, %v1397_v61  ;;  %v2351_v9 = vadd.f32 %v2340_v8, %v1399_v62  ;;  %v2256_v10 = vpop.f32.mrb[7].mxu0  ;;  %v2342_v11 = vpop.f32.mrb[7].mxu1 }
 0x33c   : > { %2354 = vst [vmem:[#allocation2 + $0x8] sm:$0xff] %v2346_v5  ;;  %2356 = vst [vmem:[#allocation2 + $0x18] sm:$0xff] %v2348_v6  ;;  %v2350_v12 = vadd.f32 %v2256_v10, %v1398_v3  ;;  %v2352_v13 = vadd.f32 %v2342_v11, %v1400_v4 }
 0x33d   : > { %2357 = vst [vmem:[#allocation2 + $0x20] sm:$0xff] %v2349_v53  ;;  %2359 = vst [vmem:[#allocation2 + $0x30] sm:$0xff] %v2351_v9 }
 0x33e   : > { %2358 = vst [vmem:[#allocation2 + $0x28] sm:$0xff] %v2350_v12  ;;  %2360 = vst [vmem:[#allocation2 + $0x38] sm:$0xff] %v2352_v13 }
 0x342   : > { %v2365_v14 = vld [vmem:[#allocation2] sm:$0xff]  ;;  %v2367_v16 = vld [vmem:[#allocation2 + $0x10] sm:$0xff] }
 0x343   : > { %v2366_v15 = vld [vmem:[#allocation2 + $0x8] sm:$0xff]  ;;  %2373 = vst [vmem:[#allocation12] sm:$0xff] %v2365_v14  ;;  %2375 = vst [vmem:[#allocation12 + $0x10] sm:$0xff] %v2367_v16  ;;  %v2368_v17 = vld [vmem:[#allocation2 + $0x18] sm:$0xff] }
 0x344   : > { %2374 = vst [vmem:[#allocation12 + $0x8] sm:$0xff] %v2366_v15  ;;  %v2369_v18 = vld [vmem:[#allocation2 + $0x20] sm:$0xff]  ;;  %2376 = vst [vmem:[#allocation12 + $0x18] sm:$0xff] %v2368_v17  ;;  %v2371_v20 = vld [vmem:[#allocation2 + $0x30] sm:$0xff] }
 0x345   : > { %v2370_v19 = vld [vmem:[#allocation2 + $0x28] sm:$0xff]  ;;  %2377 = vst [vmem:[#allocation12 + $0x20] sm:$0xff] %v2369_v18  ;;  %v2372_v21 = vld [vmem:[#allocation2 + $0x38] sm:$0xff]  ;;  %2379 = vst [vmem:[#allocation12 + $0x30] sm:$0xff] %v2371_v20 }
 0x346   : > { %2378 = vst [vmem:[#allocation12 + $0x28] sm:$0xff] %v2370_v19  ;;  %2380 = vst [vmem:[#allocation12 + $0x38] sm:$0xff] %v2372_v21 }
 0x347 PF: > { %p2876_p11 = scmp.eq.s32.totalorder %s3634_s24, 3  ;;  %s3572_s18 = smov [#allocation12]  }
 0x348   : > { %s2391_s25 = sshll.u32 %s3572_s18, 4  ;;  %s2392_s25 = int_to_ptr.vmem [resolvable:$true] %s2391_s25 }
 0x349   : > { %s3470_s11 = scalar_lea.vmem %s2392_s25, 1024  ;;  %p3477_p6 = scmp.lt.s32.totalorder %s2392_s25, %s2392_s25 }
 0x34a   : > { %p3471_p0 = scmp.ne.s32.totalorder %s2392_s25, %s3470_s11  ;;  %p3478_p8 = scmp.lt.s32.totalorder %s3470_s11, %s3470_s11 }
 0x34c   : > { %p3472_p7 = pnand %p3471_p0, %p2876_p11  ;;  %p3479_p13 = por %p3478_p8, %p3477_p6 }
 0x34e   : > { %p3473_p10 = pneg %p3472_p7 }
 0x350   : > { %p3480_p3 = pnand %p3479_p13, %p3473_p10 }
 0x352   : > { %3483 = shalt.err (!%p3480_p3)
}
 0x353   : > { %s4216_s14 = sld [smem:[#allocation23_spill]] }
 0x359   : > { %s3484_s10 = scalar_lea.hbm %s4216_s14, 1024 }
 0x35a   : > { %p3485_p1 = scmp.ne.s32.totalorder %s4216_s14, %s3484_s10  ;;  %p3490_p5 = scmp.lt.u32.totalorder %s3484_s10, %s4216_s14 }
 0x35c   : > { %p3486_p4 = pnand %p3485_p1, %p2876_p11 }
 0x35e   : > { %p3487_p9 = pneg %p3486_p4 }
 0x360   : > { %p3492_p2 = pnand %p3490_p5, %p3487_p9 }
 0x362   : > { %3495 = shalt.err (!%p3492_p2)
}
 0x363   : > { %s3573_s21 = smov 512   ;;  %s3574_s6 = smov 32  }
 0x364   : > { %2851 = dma.vmem_to_hbm [thread:$0]  (%p2876_p11), %s2392_s25, 1024, %s4216_s14, [#allocation5], %s3573_s21, %s3573_s21, %s3574_s6  }
 0x365   : > { %3537 = dma.done.wait (%p2876_p11), [#allocation5], 1024  }
 0x366   : > { %3539 = vsyncadd (%p2876_p11), [#allocation5], 4294966272 }
 0x367 PF: > { %s23_s23 = sadd.s32 1, %s3562_s23   ;;  %s4217_s30 = sld [smem:[#allocation20_spill]] }
 0x368   : > { %p20_p12 = scmp.ge.s32.totalorder %s23_s23, 6   ;;  %s4218_s9 = sld [smem:[#allocation19_spill]] }
 0x369   : > { %s4219_s18 = smov %s3546_s19  ;;  %s4220_s19 = smov %s3550_s20 }
 0x36a   : > { %s4222_s21 = smov %s3558_s22  ;;  %22 = sbr.rel (!%p20_p12) target bundleno = 12 (0xc), region = 120 }
 0x36d   : > { %s4221_s20 = smov %s4217_s30 }
 0x36e   : > { %s4223_s22 = smov %s4218_s9 }
 0x371   :  { %2407 = vsyncpa [#allocation4], 1 }
 0x372   :  { %2409 = vsyncpa [#allocation4 + $0x1], 1 }
 0x373   :  { %2410 = vsyncpa [#allocation7], 1 }
 0x374   :  { %2412 = vsyncpa [#allocation7 + $0x1], 1 }
 0x375   :  { %2413 = vsyncpa [#allocation10], 1 }
 0x376   :  { %2415 = vsyncpa [#allocation10 + $0x1], 1 }
 0x377   :  { %2416 = vsyncpa [#allocation5], 1 }
 0x378   :  { %2418 = vsyncpa [#allocation5 + $0x1], 1 }

</bundles_post_ra>
